<compile_context>
chip_gen: v7x
topology: tpu7x:2x2x1
jax: 0.10.0
libtpu: 0.0.40
codegen_flags: <defaults>
</compile_context>

<pallas_src>
import math

import jax
import jax.numpy as jnp
from jax.experimental import pallas as pl
from jax.experimental.pallas import tpu as pltpu

_SQRT_HALF = 0.7071067811865475
_LANE = 128


def _round_up(x, m):
    return ((x + m - 1) // m) * m


def _pad2d(a, rows, cols):
    """Zero-pad a 2-D f32 array to [rows, cols]."""
    out = jnp.zeros((rows, cols), jnp.float32)
    return out.at[: a.shape[0], : a.shape[1]].set(a.astype(jnp.float32))


def _nbytes(shape, dtype):
    return math.prod(shape) * jnp.dtype(dtype).itemsize


# --------------------------- stage 1: precompute -----------------------------

def _precompute_kernel(bias2d_ref, w1_ref, b1_ref, w2sel_ref, b2row_ref,
                       xkv_ref, wkv_ref, bkv_ref,
                       w_out_ref, ekc_out_ref):
    f32 = jnp.float32

    # Adaptation-bias MLP (ffnn1) for ALL layers: Nkv is folded into the M
    # dimension (no kron / zero-padded block-diagonal weights).
    h1 = jnp.dot(bias2d_ref[...], w1_ref[...], preferred_element_type=f32) + b1_ref[...]
    h1 = jnp.maximum(h1, 0.0).astype(w2sel_ref.dtype)
    w_out_ref[...] = (jnp.dot(h1, w2sel_ref[...], preferred_element_type=f32)
                      + b2row_ref[...])

    # K/V projections of every layer as ONE wide lane-dense matmul, plus the
    # xkv-only nonlinearities (exp(K), exp(K)*V) hoisted off the layer loop.
    kv = jnp.dot(xkv_ref[...], wkv_ref[...], preferred_element_type=f32) + bkv_ref[...]
    half = kv.shape[1] // 2                       # = L * Ep (multiple of 128)
    ek = jnp.exp(kv[:, :half])
    v = kv[:, half:]
    ekc_out_ref[...] = jnp.concatenate([ek * v, ek], axis=-1).astype(ekc_out_ref.dtype)


# ------------------------ stage 2: encoder stack ------------------------------

def _make_encoder_kernel(B, Nq, Nkv, Ep, compute_dtype):
    f32 = jnp.float32
    inv_rows = 1.0 / float(B * Nq)

    def add_bn(h, d, gamma, beta):
        # residual add + BatchNorm1d (training-mode stats over the B*Nq rows).
        # Single XLU reduce: [y | y*y] concatenated along lanes, scaled by 1/R.
        y = h + d
        s = jnp.sum(jnp.concatenate([y, y * y], axis=-1), axis=0, keepdims=True) * inv_rows
        mean, msq = s[:, :Ep], s[:, Ep:]
        var = msq - mean * mean                   # biased variance (PyTorch training)
        return (y - mean) * jax.lax.rsqrt(var + 1e-5) * gamma + beta

    def kernel(xq_ref, w_ref, ekc_ref,
               wq_ref, bq_ref, w2_ref, b2_ref,
               ffw1_ref, ffb1_ref, ffw2_ref, ffb2_ref,
               bn1g_ref, bn1b_ref, bn2g_ref, bn2b_ref,
               out_ref, h_ref):
        l = pl.program_id(0)

        @pl.when(l == 0)
        def _():
            h_ref[...] = xq_ref[...]              # init the h carry from x_q

        h = h_ref[...]                            # [B*Nq, Ep] f32 carry
        hc = h.astype(compute_dtype)

        # ------------------------- AFTFull attention -------------------------
        q = jnp.dot(hc, wq_ref[...], preferred_element_type=f32) + bq_ref[...]
        sig_q = jax.nn.sigmoid(q)

        w = w_ref[...]                            # [B*Nq, Nkv] f32 adaptation bias
        w = w - jnp.max(w, axis=-1, keepdims=True)   # cancels in num/den; stable exp
        ew = jnp.exp(w).astype(compute_dtype)

        ekc = ekc_ref[...]                        # [B*Nkv, 2*Ep]: [exp(K)*V | exp(K)]
        nd = []
        for b in range(B):                        # per-batch dots (no block-diag mask)
            nd.append(jnp.dot(ew[b * Nq:(b + 1) * Nq, :],
                              ekc[b * Nkv:(b + 1) * Nkv, :],
                              preferred_element_type=f32))
        numden = jnp.concatenate(nd, axis=0)      # [B*Nq, 2*Ep], lane-dense 128 split
        weighted = numden[:, :Ep] / numden[:, Ep:]   # exact division (module parity)
        yt = (sig_q * weighted).astype(compute_dtype)
        attn = jnp.dot(yt, w2_ref[...], preferred_element_type=f32) + b2_ref[...]

        h = add_bn(h, attn, bn1g_ref[...], bn1b_ref[...])

        # ----------------- feed-forward: Linear -> GELU(erf) -> Linear -------
        f1 = jnp.dot(h.astype(compute_dtype), ffw1_ref[...],
                     preferred_element_type=f32) + ffb1_ref[...]
        g = (0.5 * f1 * (1.0 + jax.lax.erf(f1 * _SQRT_HALF))).astype(compute_dtype)
        ffo = jnp.dot(g, ffw2_ref[...], preferred_element_type=f32) + ffb2_ref[...]

        h = add_bn(h, ffo, bn2g_ref[...], bn2b_ref[...])

        h_ref[...] = h                            # persist carry across grid steps

        @pl.when(l == pl.num_programs(0) - 1)
        def _():
            out_ref[...] = h                      # single lane-dense final store

    return kernel


# ------------------------------ param packing --------------------------------

def pack_params(params, compute_dtype=jnp.bfloat16):
    """Stack / pad / cast weights ONCE outside jit (cheap layout plumbing)."""
    layers = params["layers"]
    L = len(layers)
    E = layers[0]["wq"].shape[1]
    Dq = layers[0]["wq"].shape[0]
    Dkv = layers[0]["wk"].shape[0]
    C = layers[0]["ffnn1_w1"].shape[1]
    ffh = layers[0]["ff_w1"].shape[1]
    assert Dq == E, "residual h + attention(h) requires dim_q == embed_dim"
    Ep = _round_up(E, _LANE)
    Fp = _round_up(ffh, _LANE)
    cdt = compute_dtype

    # bias-MLP (ffnn1) of all layers, concatenated along lanes (no kron).
    w1_cat = jnp.concatenate([lp["ffnn1_w1"] for lp in layers], axis=1)    # [Db, C*L]
    b1_cat = jnp.concatenate([lp["ffnn1_b1"] for lp in layers], axis=1)    # [1, C*L]
    w2_sel = jnp.zeros((C * L, L), jnp.float32)                            # [C*L, L]
    for l, lp in enumerate(layers):
        w2_sel = w2_sel.at[l * C:(l + 1) * C, l:l + 1].set(lp["ffnn1_w2"])
    b2_row = jnp.concatenate([lp["ffnn1_b2"] for lp in layers], axis=1)    # [1, L]

    # K/V projections of all layers as one wide lane-dense matmul weight.
    wk_wide = jnp.concatenate([_pad2d(lp["wk"], Dkv, Ep) for lp in layers], axis=1)
    wv_wide = jnp.concatenate([_pad2d(lp["wv"], Dkv, Ep) for lp in layers], axis=1)
    bk_wide = jnp.concatenate([_pad2d(lp["bk"], 1, Ep) for lp in layers], axis=1)
    bv_wide = jnp.concatenate([_pad2d(lp["bv"], 1, Ep) for lp in layers], axis=1)

    stk = lambda name, r, c: jnp.stack([_pad2d(lp[name], r, c) for lp in layers])

    return dict(
        # precompute-stage operands
        w1_cat=w1_cat.astype(cdt), b1_cat=b1_cat,
        w2_sel=w2_sel.astype(cdt), b2_row=b2_row,
        wkv_wide=jnp.concatenate([wk_wide, wv_wide], axis=1).astype(cdt),  # [Dkv, 2*L*Ep]
        bkv_wide=jnp.concatenate([bk_wide, bv_wide], axis=1),              # [1, 2*L*Ep]
        # per-layer stacks streamed by the grid-over-L encoder kernel
        wq=stk("wq", Ep, Ep).astype(cdt), bq=stk("bq", 1, Ep),
        w2=stk("w2", Ep, Ep).astype(cdt), b2=stk("b2", 1, Ep),
        ffw1=stk("ff_w1", Ep, Fp).astype(cdt), ffb1=stk("ff_b1", 1, Fp),
        ffw2=stk("ff_w2", Fp, Ep).astype(cdt), ffb2=stk("ff_b2", 1, Ep),
        bn1g=stk("bn1_g", 1, Ep), bn1b=stk("bn1_b", 1, Ep),
        bn2g=stk("bn2_g", 1, Ep), bn2b=stk("bn2_b", 1, Ep),
    )


# --------------------------------- forward -----------------------------------

def aafm_encoder_forward(packed, x_q, x_kv, bias):
    f32 = jnp.float32
    cdt = packed["wq"].dtype
    B, Nq, Dq = x_q.shape
    _, Nkv, Dkv = x_kv.shape
    Db = bias.shape[-1]
    L, Ep, _ = packed["wq"].shape
    Fp = packed["ffw1"].shape[2]
    E = Dq                                        # == embed_dim (asserted in pack_params)
    BNq, BNkv = B * Nq, B * Nkv

    # ---- stage 1: bias-MLP (all layers) + all-layer exp(K)/exp(K)*V ---------
    bias2d = bias.reshape(B * Nq * Nkv, Db).astype(cdt)
    xkv2d = x_kv.reshape(BNkv, Dkv).astype(cdt)
    w_flat, ekc_wide = pl.pallas_call(
        _precompute_kernel,
        out_shape=(jax.ShapeDtypeStruct((B * Nq * Nkv, L), f32),
                   jax.ShapeDtypeStruct((BNkv, 2 * L * Ep), cdt)),
        compiler_params=pltpu.CompilerParams(vmem_limit_bytes=16 * 1024 * 1024),
    )(bias2d, packed["w1_cat"], packed["b1_cat"], packed["w2_sel"], packed["b2_row"],
      xkv2d, packed["wkv_wide"], packed["bkv_wide"])

    # Wrapper-side layout plumbing (HBM): per-layer views for the main kernel.
    w_adapt = w_flat.reshape(BNq, Nkv, L).transpose(2, 0, 1)               # [L, B*Nq, Nkv]
    ekc_all = (ekc_wide.reshape(BNkv, 2, L, Ep).transpose(2, 0, 1, 3)
               .reshape(L, BNkv, 2 * Ep))                                  # [L, B*Nkv, 2Ep]
    xq_p = jnp.zeros((BNq, Ep), f32).at[:, :E].set(x_q.reshape(BNq, E))

    # ---- stage 2: encoder stack, grid over layers ----------------------------
    def full(*s):
        return pl.BlockSpec(s, lambda l: (0,) * len(s))

    def perl(*s):
        return pl.BlockSpec((None,) + s, lambda l: (l,) + (0,) * len(s))

    in_specs = [
        full(BNq, Ep),                 # x_q (padded), used only at l == 0
        perl(BNq, Nkv),                # adaptation bias w, layer l
        perl(BNkv, 2 * Ep),            # [exp(K)*V | exp(K)], layer l
        perl(Ep, Ep), perl(1, Ep),     # wq, bq
        perl(Ep, Ep), perl(1, Ep),     # ffnn2 (w2), b2
        perl(Ep, Fp), perl(1, Fp),     # ff w1, b1
        perl(Fp, Ep), perl(1, Ep),     # ff w2, b2
        perl(1, Ep), perl(1, Ep),      # bn1 gamma, beta
        perl(1, Ep), perl(1, Ep),      # bn2 gamma, beta
    ]

    # VMEM budget: double-buffered per-layer blocks + resident carry/input.
    per_layer = (_nbytes((BNq, Nkv), f32) + _nbytes((BNkv, 2 * Ep), cdt)
                 + 2 * _nbytes((Ep, Ep), cdt) + _nbytes((Ep, Fp), cdt)
                 + _nbytes((Fp, Ep), cdt)
                 + 2 * _nbytes((1, Fp), f32) + 8 * _nbytes((1, Ep), f32))
    vmem_budget = max(2 * per_layer + 3 * _nbytes((BNq, Ep), f32) + (4 << 20),
                      16 * 1024 * 1024)

    out = pl.pallas_call(
        _make_encoder_kernel(B, Nq, Nkv, Ep, cdt),
        grid=(L,),
        in_specs=in_specs,
        out_specs=pl.BlockSpec((BNq, Ep), lambda l: (0, 0)),
        out_shape=jax.ShapeDtypeStruct((BNq, Ep), f32),
        scratch_shapes=[pltpu.VMEM((BNq, Ep), jnp.float32)],   # h carry across layers
        compiler_params=pltpu.CompilerParams(
            dimension_semantics=("arbitrary",),    # sequential h dependence over layers
            vmem_limit_bytes=int(vmem_budget)),
    )(xq_p, w_adapt, ekc_all,
      packed["wq"], packed["bq"], packed["w2"], packed["b2"],
      packed["ffw1"], packed["ffb1"], packed["ffw2"], packed["ffb2"],
      packed["bn1g"], packed["bn1b"], packed["bn2g"], packed["bn2b"])

    return out[:, :E].reshape(B, Nq, E)


# --------------------------- params & pure-JAX ref ---------------------------

def init_params(key, n_layers, embed_dim, dim_q, dim_kv, bias_dim, ffh):
    def lin(k, din, dout):
        kw, kb = jax.random.split(k)
        w = 0.1 * jax.random.normal(kw, (din, dout), jnp.float32)
        b = 0.1 * jax.random.normal(kb, (1, dout), jnp.float32)
        return w, b

    layers = []
    for lk in jax.random.split(key, n_layers):
        ks = jax.random.split(lk, 8)
        wq, bq = lin(ks[0], dim_q, embed_dim)
        wk, bk = lin(ks[1], dim_kv, embed_dim)
        wv, bv = lin(ks[2], dim_kv, embed_dim)
        f1w1, f1b1 = lin(ks[3], bias_dim, 32)
        f1w2, f1b2 = lin(ks[4], 32, 1)
        w2, b2 = lin(ks[5], embed_dim, embed_dim)
        ffw1, ffb1 = lin(ks[6], embed_dim, ffh)
        ffw2, ffb2 = lin(ks[7], ffh, embed_dim)
        layers.append(dict(
            wq=wq, bq=bq, wk=wk, bk=bk, wv=wv, bv=bv,
            ffnn1_w1=f1w1, ffnn1_b1=f1b1, ffnn1_w2=f1w2, ffnn1_b2=f1b2,
            w2=w2, b2=b2,
            bn1_g=jnp.ones((1, embed_dim), jnp.float32),
            bn1_b=jnp.zeros((1, embed_dim), jnp.float32),
            ff_w1=ffw1, ff_b1=ffb1, ff_w2=ffw2, ff_b2=ffb2,
            bn2_g=jnp.ones((1, embed_dim), jnp.float32),
            bn2_b=jnp.zeros((1, embed_dim), jnp.float32),
        ))
    return {"layers": layers}


def ref_forward(params, x_q, x_kv, bias):
    """Pure-JAX reference mirroring the PyTorch forward semantics."""
    def bn(x, g, b):
        B, N, E = x.shape
        x2 = x.reshape(B * N, E)
        m = x2.mean(0, keepdims=True)
        v = ((x2 - m) ** 2).mean(0, keepdims=True)
        return (((x2 - m) / jnp.sqrt(v + 1e-5)) * g + b).reshape(B, N, E)

    B, Nq, Nkv, Db = bias.shape
    h = x_q
    for lp in params["layers"]:
        bf = bias.reshape(B, Nq * Nkv, Db)
        wmlp = jnp.maximum(bf @ lp["ffnn1_w1"] + lp["ffnn1_b1"], 0.0) @ lp["ffnn1_w2"] + lp["ffnn1_b2"]
        w = wmlp.reshape(B, Nq, Nkv)
        Q = h @ lp["wq"] + lp["bq"]
        K = x_kv @ lp["wk"] + lp["bk"]
        V = x_kv @ lp["wv"] + lp["bv"]
        expK = jnp.exp(K)
        expKV = expK * V
        ew = jnp.exp(w)
        weighted = jnp.einsum("bqk,bkh->bqh", ew, expKV) / jnp.einsum("bqk,bkh->bqh", ew, expK)
        Yt = jax.nn.sigmoid(Q) * weighted
        attn = Yt @ lp["w2"] + lp["b2"]
        h = bn(h + attn, lp["bn1_g"], lp["bn1_b"])
        h1 = h @ lp["ff_w1"] + lp["ff_b1"]
        g = 0.5 * h1 * (1.0 + jax.lax.erf(h1 * _SQRT_HALF))
        ffo = g @ lp["ff_w2"] + lp["ff_b2"]
        h = bn(h + ffo, lp["bn2_g"], lp["bn2_b"])
    return h


# ----------------------------------- main -------------------------------------

if __name__ == "__main__":
    B, Nq, Nkv = 2, 8, 8
    embed_dim = 32
    dim_q = 32          # residual h + attention(h) requires dim_q == embed_dim
    dim_kv = 16
    bias_dim = 4
    ffh = 64
    n_layers = 2

    key = jax.random.PRNGKey(0)
    k1, k2, k3, kp = jax.random.split(key, 4)
    x_q = jax.random.normal(k1, (B, Nq, dim_q), jnp.float32)
    x_kv = jax.random.normal(k2, (B, Nkv, dim_kv), jnp.float32)
    bias = jax.random.normal(k3, (B, Nq, Nkv, bias_dim), jnp.float32)
    params = init_params(kp, n_layers, embed_dim, dim_q, dim_kv, bias_dim, ffh)

    ref = ref_forward(params, x_q, x_kv, bias)
    fwd = jax.jit(aafm_encoder_forward)

    # f32 compute path: parity with the module (tolerance covers XLA's default
    # TPU matmul precision in the reference vs the kernel's MXU path).
    out_f32 = jax.block_until_ready(fwd(pack_params(params, jnp.float32), x_q, x_kv, bias))
    assert out_f32.shape == (B, Nq, embed_dim)
    assert bool(jnp.all(jnp.isfinite(out_f32)))
    assert bool(jnp.allclose(out_f32, ref, atol=1e-2, rtol=1e-2))

    # Default fast path: bf16 MXU operands, f32 accumulation / BN / exp / div.
    out_bf16 = jax.block_until_ready(fwd(pack_params(params, jnp.bfloat16), x_q, x_kv, bias))
    assert out_bf16.shape == (B, Nq, embed_dim)
    assert bool(jnp.all(jnp.isfinite(out_bf16)))
    assert bool(jnp.allclose(out_bf16, ref, atol=3e-2, rtol=3e-2))

    print("KERNEL_OK")
</pallas_src>

<mosaic_0001>
module attributes {stable_mosaic.version = 11 : i64} {
  func.func @_precompute_kernel(%arg0: memref<128x4xf32, #tpu.memory_space<vmem>>, %arg1: memref<4x64xf32, #tpu.memory_space<vmem>>, %arg2: memref<1x64xf32, #tpu.memory_space<vmem>>, %arg3: memref<64x2xf32, #tpu.memory_space<vmem>>, %arg4: memref<1x2xf32, #tpu.memory_space<vmem>>, %arg5: memref<16x16xf32, #tpu.memory_space<vmem>>, %arg6: memref<16x512xf32, #tpu.memory_space<vmem>>, %arg7: memref<1x512xf32, #tpu.memory_space<vmem>>, %arg8: memref<128x2xf32, #tpu.memory_space<vmem>>, %arg9: memref<16x512xf32, #tpu.memory_space<vmem>>) attributes {dimension_semantics = [], scalar_prefetch = 0 : i64, scratch_operands = 0 : i64, tpu.core_type = #tpu.core_type<tc>} {
    %c0 = arith.constant 0 : index
    %c0_0 = arith.constant 0 : index
    %0 = vector.load %arg0[%c0, %c0_0] : memref<128x4xf32, #tpu.memory_space<vmem>>, vector<128x4xf32>
    %c0_1 = arith.constant 0 : index
    %c0_2 = arith.constant 0 : index
    %1 = vector.load %arg1[%c0_1, %c0_2] : memref<4x64xf32, #tpu.memory_space<vmem>>, vector<4x64xf32>
    %cst = arith.constant dense<0.000000e+00> : vector<128x64xf32>
    %2 = tpu.matmul %0, %1, %cst {dimension_numbers = #tpu.dot_dimension_numbers<[1], [0], [0], [1], [0, 0, 1, 1], [], []>} : vector<128x4xf32>, vector<4x64xf32>, vector<128x64xf32> -> vector<128x64xf32>
    %c0_3 = arith.constant 0 : index
    %c0_4 = arith.constant 0 : index
    %3 = vector.load %arg2[%c0_3, %c0_4] : memref<1x64xf32, #tpu.memory_space<vmem>>, vector<1x64xf32>
    %4 = vector.broadcast %3 : vector<1x64xf32> to vector<128x64xf32>
    %5 = arith.addf %2, %4 : vector<128x64xf32>
    %cst_5 = arith.constant 0.000000e+00 : f32
    %6 = vector.broadcast %cst_5 : f32 to vector<128x64xf32>
    %7 = arith.maximumf %5, %6 : vector<128x64xf32>
    %c0_6 = arith.constant 0 : index
    %c0_7 = arith.constant 0 : index
    %8 = vector.load %arg3[%c0_6, %c0_7] : memref<64x2xf32, #tpu.memory_space<vmem>>, vector<64x2xf32>
    %cst_8 = arith.constant dense<0.000000e+00> : vector<128x2xf32>
    %9 = tpu.matmul %7, %8, %cst_8 {dimension_numbers = #tpu.dot_dimension_numbers<[1], [0], [0], [1], [0, 0, 1, 1], [], []>} : vector<128x64xf32>, vector<64x2xf32>, vector<128x2xf32> -> vector<128x2xf32>
    %c0_9 = arith.constant 0 : index
    %c0_10 = arith.constant 0 : index
    %10 = vector.load %arg4[%c0_9, %c0_10] : memref<1x2xf32, #tpu.memory_space<vmem>>, vector<1x2xf32>
    %11 = vector.broadcast %10 : vector<1x2xf32> to vector<128x2xf32>
    %12 = arith.addf %9, %11 : vector<128x2xf32>
    %c0_11 = arith.constant 0 : index
    %c0_12 = arith.constant 0 : index
    %13 = vector.load %arg8[%c0_11, %c0_12] : memref<128x2xf32, #tpu.memory_space<vmem>>, vector<128x2xf32>
    tpu.vector_store %arg8[%c0_11, %c0_12], %12 {strides = array<i32>} : memref<128x2xf32, #tpu.memory_space<vmem>>, vector<128x2xf32>,
    %c0_13 = arith.constant 0 : index
    %c0_14 = arith.constant 0 : index
    %14 = vector.load %arg5[%c0_13, %c0_14] : memref<16x16xf32, #tpu.memory_space<vmem>>, vector<16x16xf32>
    %c0_15 = arith.constant 0 : index
    %c0_16 = arith.constant 0 : index
    %15 = vector.load %arg6[%c0_15, %c0_16] : memref<16x512xf32, #tpu.memory_space<vmem>>, vector<16x512xf32>
    %cst_17 = arith.constant dense<0.000000e+00> : vector<16x512xf32>
    %16 = tpu.matmul %14, %15, %cst_17 {dimension_numbers = #tpu.dot_dimension_numbers<[1], [0], [0], [1], [0, 0, 1, 1], [], []>} : vector<16x16xf32>, vector<16x512xf32>, vector<16x512xf32> -> vector<16x512xf32>
    %c0_18 = arith.constant 0 : index
    %c0_19 = arith.constant 0 : index
    %17 = vector.load %arg7[%c0_18, %c0_19] : memref<1x512xf32, #tpu.memory_space<vmem>>, vector<1x512xf32>
    %18 = vector.broadcast %17 : vector<1x512xf32> to vector<16x512xf32>
    %19 = arith.addf %16, %18 : vector<16x512xf32>
    %20 = vector.extract_strided_slice %19 {offsets = [0, 0], sizes = [16, 256], strides = [1, 1]} : vector<16x512xf32> to vector<16x256xf32>
    %21 = math.exp %20 : vector<16x256xf32>
    %22 = vector.extract_strided_slice %19 {offsets = [0, 256], sizes = [16, 256], strides = [1, 1]} : vector<16x512xf32> to vector<16x256xf32>
    %23 = arith.mulf %21, %22 : vector<16x256xf32>
    %24 = tpu.concatenate %23, %21 in 1 : vector<16x256xf32>, vector<16x256xf32> -> vector<16x512xf32>
    %c0_20 = arith.constant 0 : index
    %c0_21 = arith.constant 0 : index
    %25 = vector.load %arg9[%c0_20, %c0_21] : memref<16x512xf32, #tpu.memory_space<vmem>>, vector<16x512xf32>
    tpu.vector_store %arg9[%c0_20, %c0_21], %24 {strides = array<i32>} : memref<16x512xf32, #tpu.memory_space<vmem>>, vector<16x512xf32>,
    return
  }
}

module attributes {stable_mosaic.version = 11 : i64} {
  func.func @kernel(%arg0: i32, %arg1: memref<16x128xf32, #tpu.memory_space<vmem>>, %arg2: memref<1x16x8xf32, #tpu.memory_space<vmem>>, %arg3: memref<1x16x256xf32, #tpu.memory_space<vmem>>, %arg4: memref<1x128x128xf32, #tpu.memory_space<vmem>>, %arg5: memref<1x1x128xf32, #tpu.memory_space<vmem>>, %arg6: memref<1x128x128xf32, #tpu.memory_space<vmem>>, %arg7: memref<1x1x128xf32, #tpu.memory_space<vmem>>, %arg8: memref<1x128x128xf32, #tpu.memory_space<vmem>>, %arg9: memref<1x1x128xf32, #tpu.memory_space<vmem>>, %arg10: memref<1x128x128xf32, #tpu.memory_space<vmem>>, %arg11: memref<1x1x128xf32, #tpu.memory_space<vmem>>, %arg12: memref<1x1x128xf32, #tpu.memory_space<vmem>>, %arg13: memref<1x1x128xf32, #tpu.memory_space<vmem>>, %arg14: memref<1x1x128xf32, #tpu.memory_space<vmem>>, %arg15: memref<1x1x128xf32, #tpu.memory_space<vmem>>, %arg16: memref<16x128xf32, #tpu.memory_space<vmem>>, %arg17: memref<16x128xf32, #tpu.memory_space<vmem>>) attributes {dimension_semantics = [#tpu.dimension_semantics<arbitrary>], iteration_bounds = array<i64: 2>, scalar_prefetch = 0 : i64, scratch_operands = 1 : i64, tpu.core_type = #tpu.core_type<tc>, window_params = [{pipeline_mode = #tpu.pipeline_mode<synchronous>, transform_indices = @transform_0, window_bounds = array<i64: 16, 128>}, {transform_indices = @transform_1, window_bounds = array<i64: 1, 16, 8>}, {transform_indices = @transform_2, window_bounds = array<i64: 1, 16, 256>}, {transform_indices = @transform_3, window_bounds = array<i64: 1, 128, 128>}, {transform_indices = @transform_4, window_bounds = array<i64: 1, 1, 128>}, {transform_indices = @transform_5, window_bounds = array<i64: 1, 128, 128>}, {transform_indices = @transform_6, window_bounds = array<i64: 1, 1, 128>}, {transform_indices = @transform_7, window_bounds = array<i64: 1, 128, 128>}, {transform_indices = @transform_8, window_bounds = array<i64: 1, 1, 128>}, {transform_indices = @transform_9, window_bounds = array<i64: 1, 128, 128>}, {transform_indices = @transform_10, window_bounds = array<i64: 1, 1, 128>}, {transform_indices = @transform_11, window_bounds = array<i64: 1, 1, 128>}, {transform_indices = @transform_12, window_bounds = array<i64: 1, 1, 128>}, {transform_indices = @transform_13, window_bounds = array<i64: 1, 1, 128>}, {transform_indices = @transform_14, window_bounds = array<i64: 1, 1, 128>}, {pipeline_mode = #tpu.pipeline_mode<synchronous>, transform_indices = @transform_15, window_bounds = array<i64: 16, 128>}]} {
    %c0_i32 = arith.constant 0 : i32
    %0 = arith.cmpi eq, %arg0, %c0_i32 : i32
    %1 = arith.extui %0 : i1 to i32
    %c0_i32_0 = arith.constant 0 : i32
    %2 = arith.cmpi ne, %1, %c0_i32_0 : i32
    scf.if %2 {
      %c0_63 = arith.constant 0 : index
      %c0_64 = arith.constant 0 : index
      %121 = vector.load %arg1[%c0_63, %c0_64] : memref<16x128xf32, #tpu.memory_space<vmem>>, vector<16x128xf32>
      %c0_65 = arith.constant 0 : index
      %c0_66 = arith.constant 0 : index
      %122 = vector.load %arg17[%c0_65, %c0_66] : memref<16x128xf32, #tpu.memory_space<vmem>>, vector<16x128xf32>
      tpu.vector_store %arg17[%c0_65, %c0_66], %121 {strides = array<i32>} : memref<16x128xf32, #tpu.memory_space<vmem>>, vector<16x128xf32>,
    } else {
    }
    %c0 = arith.constant 0 : index
    %c0_1 = arith.constant 0 : index
    %3 = vector.load %arg17[%c0, %c0_1] : memref<16x128xf32, #tpu.memory_space<vmem>>, vector<16x128xf32>
    %c0_2 = arith.constant 0 : index
    %c0_3 = arith.constant 0 : index
    %c0_4 = arith.constant 0 : index
    %4 = vector.load %arg4[%c0_2, %c0_3, %c0_4] : memref<1x128x128xf32, #tpu.memory_space<vmem>>, vector<1x128x128xf32>
    %5 = vector.shape_cast %4 : vector<1x128x128xf32> to vector<128x128xf32>
    %cst = arith.constant dense<0.000000e+00> : vector<16x128xf32>
    %6 = tpu.matmul %3, %5, %cst {dimension_numbers = #tpu.dot_dimension_numbers<[1], [0], [0], [1], [0, 0, 1, 1], [], []>} : vector<16x128xf32>, vector<128x128xf32>, vector<16x128xf32> -> vector<16x128xf32>
    %c0_5 = arith.constant 0 : index
    %c0_6 = arith.constant 0 : index
    %c0_7 = arith.constant 0 : index
    %7 = vector.load %arg5[%c0_5, %c0_6, %c0_7] : memref<1x1x128xf32, #tpu.memory_space<vmem>>, vector<1x1x128xf32>
    %8 = vector.shape_cast %7 : vector<1x1x128xf32> to vector<1x128xf32>
    %9 = vector.broadcast %8 : vector<1x128xf32> to vector<16x128xf32>
    %10 = arith.addf %6, %9 : vector<16x128xf32>
    %11 = arith.negf %10 : vector<16x128xf32>
    %12 = math.exp %11 : vector<16x128xf32>
    %cst_8 = arith.constant 1.000000e+00 : f32
    %13 = vector.broadcast %cst_8 : f32 to vector<16x128xf32>
    %14 = arith.addf %13, %12 : vector<16x128xf32>
    %15 = arith.divf %13, %14 : vector<16x128xf32>
    %c0_9 = arith.constant 0 : index
    %c0_10 = arith.constant 0 : index
    %c0_11 = arith.constant 0 : index
    %16 = vector.load %arg2[%c0_9, %c0_10, %c0_11] : memref<1x16x8xf32, #tpu.memory_space<vmem>>, vector<1x16x8xf32>
    %17 = vector.shape_cast %16 : vector<1x16x8xf32> to vector<16x8xf32>
    %cst_12 = arith.constant dense<0xFF800000> : vector<16xf32>
    %18 = vector.multi_reduction <maximumf>, %17, %cst_12 [1] : vector<16x8xf32> to vector<16xf32>
    %19 = vector.shape_cast %18 : vector<16xf32> to vector<16x1xf32>
    %20 = vector.broadcast %19 : vector<16x1xf32> to vector<16x8xf32>
    %21 = arith.subf %17, %20 : vector<16x8xf32>
    %22 = math.exp %21 : vector<16x8xf32>
    %c0_13 = arith.constant 0 : index
    %c0_14 = arith.constant 0 : index
    %c0_15 = arith.constant 0 : index
    %23 = vector.load %arg3[%c0_13, %c0_14, %c0_15] : memref<1x16x256xf32, #tpu.memory_space<vmem>>, vector<1x16x256xf32>
    %24 = vector.shape_cast %23 : vector<1x16x256xf32> to vector<16x256xf32>
    %25 = vector.extract_strided_slice %22 {offsets = [0, 0], sizes = [8, 8], strides = [1, 1]} : vector<16x8xf32> to vector<8x8xf32>
    %26 = vector.extract_strided_slice %24 {offsets = [0, 0], sizes = [8, 256], strides = [1, 1]} : vector<16x256xf32> to vector<8x256xf32>
    %cst_16 = arith.constant dense<0.000000e+00> : vector<8x256xf32>
    %27 = tpu.matmul %25, %26, %cst_16 {dimension_numbers = #tpu.dot_dimension_numbers<[1], [0], [0], [1], [0, 0, 1, 1], [], []>} : vector<8x8xf32>, vector<8x256xf32>, vector<8x256xf32> -> vector<8x256xf32>
    %28 = vector.extract_strided_slice %22 {offsets = [8, 0], sizes = [8, 8], strides = [1, 1]} : vector<16x8xf32> to vector<8x8xf32>
    %29 = vector.extract_strided_slice %24 {offsets = [8, 0], sizes = [8, 256], strides = [1, 1]} : vector<16x256xf32> to vector<8x256xf32>
    %cst_17 = arith.constant dense<0.000000e+00> : vector<8x256xf32>
    %30 = tpu.matmul %28, %29, %cst_17 {dimension_numbers = #tpu.dot_dimension_numbers<[1], [0], [0], [1], [0, 0, 1, 1], [], []>} : vector<8x8xf32>, vector<8x256xf32>, vector<8x256xf32> -> vector<8x256xf32>
    %31 = tpu.concatenate %27, %30 in 0 : vector<8x256xf32>, vector<8x256xf32> -> vector<16x256xf32>
    %32 = vector.extract_strided_slice %31 {offsets = [0, 0], sizes = [16, 128], strides = [1, 1]} : vector<16x256xf32> to vector<16x128xf32>
    %33 = vector.extract_strided_slice %31 {offsets = [0, 128], sizes = [16, 128], strides = [1, 1]} : vector<16x256xf32> to vector<16x128xf32>
    %34 = arith.divf %32, %33 : vector<16x128xf32>
    %35 = arith.mulf %15, %34 : vector<16x128xf32>
    %c0_18 = arith.constant 0 : index
    %c0_19 = arith.constant 0 : index
    %c0_20 = arith.constant 0 : index
    %36 = vector.load %arg6[%c0_18, %c0_19, %c0_20] : memref<1x128x128xf32, #tpu.memory_space<vmem>>, vector<1x128x128xf32>
    %37 = vector.shape_cast %36 : vector<1x128x128xf32> to vector<128x128xf32>
    %cst_21 = arith.constant dense<0.000000e+00> : vector<16x128xf32>
    %38 = tpu.matmul %35, %37, %cst_21 {dimension_numbers = #tpu.dot_dimension_numbers<[1], [0], [0], [1], [0, 0, 1, 1], [], []>} : vector<16x128xf32>, vector<128x128xf32>, vector<16x128xf32> -> vector<16x128xf32>
    %c0_22 = arith.constant 0 : index
    %c0_23 = arith.constant 0 : index
    %c0_24 = arith.constant 0 : index
    %39 = vector.load %arg7[%c0_22, %c0_23, %c0_24] : memref<1x1x128xf32, #tpu.memory_space<vmem>>, vector<1x1x128xf32>
    %40 = vector.shape_cast %39 : vector<1x1x128xf32> to vector<1x128xf32>
    %41 = vector.broadcast %40 : vector<1x128xf32> to vector<16x128xf32>
    %42 = arith.addf %38, %41 : vector<16x128xf32>
    %c0_25 = arith.constant 0 : index
    %c0_26 = arith.constant 0 : index
    %c0_27 = arith.constant 0 : index
    %43 = vector.load %arg12[%c0_25, %c0_26, %c0_27] : memref<1x1x128xf32, #tpu.memory_space<vmem>>, vector<1x1x128xf32>
    %44 = vector.shape_cast %43 : vector<1x1x128xf32> to vector<1x128xf32>
    %c0_28 = arith.constant 0 : index
    %c0_29 = arith.constant 0 : index
    %c0_30 = arith.constant 0 : index
    %45 = vector.load %arg13[%c0_28, %c0_29, %c0_30] : memref<1x1x128xf32, #tpu.memory_space<vmem>>, vector<1x1x128xf32>
    %46 = vector.shape_cast %45 : vector<1x1x128xf32> to vector<1x128xf32>
    %47 = arith.addf %3, %42 : vector<16x128xf32>
    %48 = arith.mulf %47, %47 : vector<16x128xf32>
    %49 = tpu.concatenate %47, %48 in 1 : vector<16x128xf32>, vector<16x128xf32> -> vector<16x256xf32>
    %cst_31 = arith.constant dense<0.000000e+00> : vector<256xf32>
    %50 = vector.multi_reduction <add>, %49, %cst_31 [0] : vector<16x256xf32> to vector<256xf32>
    %51 = vector.shape_cast %50 : vector<256xf32> to vector<1x256xf32>
    %cst_32 = arith.constant 6.250000e-02 : f32
    %52 = vector.broadcast %cst_32 : f32 to vector<1x256xf32>
    %53 = arith.mulf %51, %52 : vector<1x256xf32>
    %54 = vector.extract_strided_slice %53 {offsets = [0, 0], sizes = [1, 128], strides = [1, 1]} : vector<1x256xf32> to vector<1x128xf32>
    %55 = vector.extract_strided_slice %53 {offsets = [0, 128], sizes = [1, 128], strides = [1, 1]} : vector<1x256xf32> to vector<1x128xf32>
    %56 = arith.mulf %54, %54 : vector<1x128xf32>
    %57 = arith.subf %55, %56 : vector<1x128xf32>
    %58 = vector.broadcast %54 : vector<1x128xf32> to vector<16x128xf32>
    %59 = arith.subf %47, %58 : vector<16x128xf32>
    %cst_33 = arith.constant 9.99999974E-6 : f32
    %60 = vector.broadcast %cst_33 : f32 to vector<1x128xf32>
    %61 = arith.addf %57, %60 : vector<1x128xf32>
    %62 = math.rsqrt %61 : vector<1x128xf32>
    %63 = vector.broadcast %62 : vector<1x128xf32> to vector<16x128xf32>
    %64 = arith.mulf %59, %63 : vector<16x128xf32>
    %65 = vector.broadcast %44 : vector<1x128xf32> to vector<16x128xf32>
    %66 = arith.mulf %64, %65 : vector<16x128xf32>
    %67 = vector.broadcast %46 : vector<1x128xf32> to vector<16x128xf32>
    %68 = arith.addf %66, %67 : vector<16x128xf32>
    %c0_34 = arith.constant 0 : index
    %c0_35 = arith.constant 0 : index
    %c0_36 = arith.constant 0 : index
    %69 = vector.load %arg8[%c0_34, %c0_35, %c0_36] : memref<1x128x128xf32, #tpu.memory_space<vmem>>, vector<1x128x128xf32>
    %70 = vector.shape_cast %69 : vector<1x128x128xf32> to vector<128x128xf32>
    %cst_37 = arith.constant dense<0.000000e+00> : vector<16x128xf32>
    %71 = tpu.matmul %68, %70, %cst_37 {dimension_numbers = #tpu.dot_dimension_numbers<[1], [0], [0], [1], [0, 0, 1, 1], [], []>} : vector<16x128xf32>, vector<128x128xf32>, vector<16x128xf32> -> vector<16x128xf32>
    %c0_38 = arith.constant 0 : index
    %c0_39 = arith.constant 0 : index
    %c0_40 = arith.constant 0 : index
    %72 = vector.load %arg9[%c0_38, %c0_39, %c0_40] : memref<1x1x128xf32, #tpu.memory_space<vmem>>, vector<1x1x128xf32>
    %73 = vector.shape_cast %72 : vector<1x1x128xf32> to vector<1x128xf32>
    %74 = vector.broadcast %73 : vector<1x128xf32> to vector<16x128xf32>
    %75 = arith.addf %71, %74 : vector<16x128xf32>
    %cst_41 = arith.constant 5.000000e-01 : f32
    %76 = vector.broadcast %cst_41 : f32 to vector<16x128xf32>
    %77 = arith.mulf %76, %75 : vector<16x128xf32>
    %cst_42 = arith.constant 0.707106769 : f32
    %78 = vector.broadcast %cst_42 : f32 to vector<16x128xf32>
    %79 = arith.mulf %75, %78 : vector<16x128xf32>
    %80 = math.erf %79 : vector<16x128xf32>
    %cst_43 = arith.constant 1.000000e+00 : f32
    %81 = vector.broadcast %cst_43 : f32 to vector<16x128xf32>
    %82 = arith.addf %81, %80 : vector<16x128xf32>
    %83 = arith.mulf %77, %82 : vector<16x128xf32>
    %c0_44 = arith.constant 0 : index
    %c0_45 = arith.constant 0 : index
    %c0_46 = arith.constant 0 : index
    %84 = vector.load %arg10[%c0_44, %c0_45, %c0_46] : memref<1x128x128xf32, #tpu.memory_space<vmem>>, vector<1x128x128xf32>
    %85 = vector.shape_cast %84 : vector<1x128x128xf32> to vector<128x128xf32>
    %cst_47 = arith.constant dense<0.000000e+00> : vector<16x128xf32>
    %86 = tpu.matmul %83, %85, %cst_47 {dimension_numbers = #tpu.dot_dimension_numbers<[1], [0], [0], [1], [0, 0, 1, 1], [], []>} : vector<16x128xf32>, vector<128x128xf32>, vector<16x128xf32> -> vector<16x128xf32>
    %c0_48 = arith.constant 0 : index
    %c0_49 = arith.constant 0 : index
    %c0_50 = arith.constant 0 : index
    %87 = vector.load %arg11[%c0_48, %c0_49, %c0_50] : memref<1x1x128xf32, #tpu.memory_space<vmem>>, vector<1x1x128xf32>
    %88 = vector.shape_cast %87 : vector<1x1x128xf32> to vector<1x128xf32>
    %89 = vector.broadcast %88 : vector<1x128xf32> to vector<16x128xf32>
    %90 = arith.addf %86, %89 : vector<16x128xf32>
    %c0_51 = arith.constant 0 : index
    %c0_52 = arith.constant 0 : index
    %c0_53 = arith.constant 0 : index
    %91 = vector.load %arg14[%c0_51, %c0_52, %c0_53] : memref<1x1x128xf32, #tpu.memory_space<vmem>>, vector<1x1x128xf32>
    %92 = vector.shape_cast %91 : vector<1x1x128xf32> to vector<1x128xf32>
    %c0_54 = arith.constant 0 : index
    %c0_55 = arith.constant 0 : index
    %c0_56 = arith.constant 0 : index
    %93 = vector.load %arg15[%c0_54, %c0_55, %c0_56] : memref<1x1x128xf32, #tpu.memory_space<vmem>>, vector<1x1x128xf32>
    %94 = vector.shape_cast %93 : vector<1x1x128xf32> to vector<1x128xf32>
    %95 = arith.addf %68, %90 : vector<16x128xf32>
    %96 = arith.mulf %95, %95 : vector<16x128xf32>
    %97 = tpu.concatenate %95, %96 in 1 : vector<16x128xf32>, vector<16x128xf32> -> vector<16x256xf32>
    %cst_57 = arith.constant dense<0.000000e+00> : vector<256xf32>
    %98 = vector.multi_reduction <add>, %97, %cst_57 [0] : vector<16x256xf32> to vector<256xf32>
    %99 = vector.shape_cast %98 : vector<256xf32> to vector<1x256xf32>
    %cst_58 = arith.constant 6.250000e-02 : f32
    %100 = vector.broadcast %cst_58 : f32 to vector<1x256xf32>
    %101 = arith.mulf %99, %100 : vector<1x256xf32>
    %102 = vector.extract_strided_slice %101 {offsets = [0, 0], sizes = [1, 128], strides = [1, 1]} : vector<1x256xf32> to vector<1x128xf32>
    %103 = vector.extract_strided_slice %101 {offsets = [0, 128], sizes = [1, 128], strides = [1, 1]} : vector<1x256xf32> to vector<1x128xf32>
    %104 = arith.mulf %102, %102 : vector<1x128xf32>
    %105 = arith.subf %103, %104 : vector<1x128xf32>
    %106 = vector.broadcast %102 : vector<1x128xf32> to vector<16x128xf32>
    %107 = arith.subf %95, %106 : vector<16x128xf32>
    %cst_59 = arith.constant 9.99999974E-6 : f32
    %108 = vector.broadcast %cst_59 : f32 to vector<1x128xf32>
    %109 = arith.addf %105, %108 : vector<1x128xf32>
    %110 = math.rsqrt %109 : vector<1x128xf32>
    %111 = vector.broadcast %110 : vector<1x128xf32> to vector<16x128xf32>
    %112 = arith.mulf %107, %111 : vector<16x128xf32>
    %113 = vector.broadcast %92 : vector<1x128xf32> to vector<16x128xf32>
    %114 = arith.mulf %112, %113 : vector<16x128xf32>
    %115 = vector.broadcast %94 : vector<1x128xf32> to vector<16x128xf32>
    %116 = arith.addf %114, %115 : vector<16x128xf32>
    %c0_60 = arith.constant 0 : index
    %c0_61 = arith.constant 0 : index
    %117 = vector.load %arg17[%c0_60, %c0_61] : memref<16x128xf32, #tpu.memory_space<vmem>>, vector<16x128xf32>
    tpu.vector_store %arg17[%c0_60, %c0_61], %116 {strides = array<i32>} : memref<16x128xf32, #tpu.memory_space<vmem>>, vector<16x128xf32>,
    %c1_i32 = arith.constant 1 : i32
    %118 = arith.cmpi eq, %arg0, %c1_i32 : i32
    %119 = arith.extui %118 : i1 to i32
    %c0_i32_62 = arith.constant 0 : i32
    %120 = arith.cmpi ne, %119, %c0_i32_62 : i32
    scf.if %120 {
      %c0_63 = arith.constant 0 : index
      %c0_64 = arith.constant 0 : index
      %121 = vector.load %arg16[%c0_63, %c0_64] : memref<16x128xf32, #tpu.memory_space<vmem>>, vector<16x128xf32>
      tpu.vector_store %arg16[%c0_63, %c0_64], %116 {strides = array<i32>} : memref<16x128xf32, #tpu.memory_space<vmem>>, vector<16x128xf32>,
    } else {
    }
    return
  }
  func.func @transform_0(%arg0: i32) -> (i32, i32) {
    %c0_i32 = arith.constant 0 : i32
    %c0_i32_0 = arith.constant 0 : i32
    %c0_i32_1 = arith.constant 0 : i32
    return %c0_i32, %c0_i32_0 : i32, i32
  }
  func.func @transform_1(%arg0: i32) -> (i32, i32, i32) {
    %c0_i32 = arith.constant 0 : i32
    %c0_i32_0 = arith.constant 0 : i32
    %c0_i32_1 = arith.constant 0 : i32
    return %arg0, %c0_i32, %c0_i32_0 : i32, i32, i32
  }
  func.func @transform_2(%arg0: i32) -> (i32, i32, i32) {
    %c0_i32 = arith.constant 0 : i32
    %c0_i32_0 = arith.constant 0 : i32
    %c0_i32_1 = arith.constant 0 : i32
    return %arg0, %c0_i32, %c0_i32_0 : i32, i32, i32
  }
  func.func @transform_3(%arg0: i32) -> (i32, i32, i32) {
    %c0_i32 = arith.constant 0 : i32
    %c0_i32_0 = arith.constant 0 : i32
    %c0_i32_1 = arith.constant 0 : i32
    return %arg0, %c0_i32, %c0_i32_0 : i32, i32, i32
  }
  func.func @transform_4(%arg0: i32) -> (i32, i32, i32) {
    %c0_i32 = arith.constant 0 : i32
    %c0_i32_0 = arith.constant 0 : i32
    %c0_i32_1 = arith.constant 0 : i32
    return %arg0, %c0_i32, %c0_i32_0 : i32, i32, i32
  }
  func.func @transform_5(%arg0: i32) -> (i32, i32, i32) {
    %c0_i32 = arith.constant 0 : i32
    %c0_i32_0 = arith.constant 0 : i32
    %c0_i32_1 = arith.constant 0 : i32
    return %arg0, %c0_i32, %c0_i32_0 : i32, i32, i32
  }
  func.func @transform_6(%arg0: i32) -> (i32, i32, i32) {
    %c0_i32 = arith.constant 0 : i32
    %c0_i32_0 = arith.constant 0 : i32
    %c0_i32_1 = arith.constant 0 : i32
    return %arg0, %c0_i32, %c0_i32_0 : i32, i32, i32
  }
  func.func @transform_7(%arg0: i32) -> (i32, i32, i32) {
    %c0_i32 = arith.constant 0 : i32
    %c0_i32_0 = arith.constant 0 : i32
    %c0_i32_1 = arith.constant 0 : i32
    return %arg0, %c0_i32, %c0_i32_0 : i32, i32, i32
  }
  func.func @transform_8(%arg0: i32) -> (i32, i32, i32) {
    %c0_i32 = arith.constant 0 : i32
    %c0_i32_0 = arith.constant 0 : i32
    %c0_i32_1 = arith.constant 0 : i32
    return %arg0, %c0_i32, %c0_i32_0 : i32, i32, i32
  }
  func.func @transform_9(%arg0: i32) -> (i32, i32, i32) {
    %c0_i32 = arith.constant 0 : i32
    %c0_i32_0 = arith.constant 0 : i32
    %c0_i32_1 = arith.constant 0 : i32
    return %arg0, %c0_i32, %c0_i32_0 : i32, i32, i32
  }
  func.func @transform_10(%arg0: i32) -> (i32, i32, i32) {
    %c0_i32 = arith.constant 0 : i32
    %c0_i32_0 = arith.constant 0 : i32
    %c0_i32_1 = arith.constant 0 : i32
    return %arg0, %c0_i32, %c0_i32_0 : i32, i32, i32
  }
  func.func @transform_11(%arg0: i32) -> (i32, i32, i32) {
    %c0_i32 = arith.constant 0 : i32
    %c0_i32_0 = arith.constant 0 : i32
    %c0_i32_1 = arith.constant 0 : i32
    return %arg0, %c0_i32, %c0_i32_0 : i32, i32, i32
  }
  func.func @transform_12(%arg0: i32) -> (i32, i32, i32) {
    %c0_i32 = arith.constant 0 : i32
    %c0_i32_0 = arith.constant 0 : i32
    %c0_i32_1 = arith.constant 0 : i32
    return %arg0, %c0_i32, %c0_i32_0 : i32, i32, i32
  }
  func.func @transform_13(%arg0: i32) -> (i32, i32, i32) {
    %c0_i32 = arith.constant 0 : i32
    %c0_i32_0 = arith.constant 0 : i32
    %c0_i32_1 = arith.constant 0 : i32
    return %arg0, %c0_i32, %c0_i32_0 : i32, i32, i32
  }
  func.func @transform_14(%arg0: i32) -> (i32, i32, i32) {
    %c0_i32 = arith.constant 0 : i32
    %c0_i32_0 = arith.constant 0 : i32
    %c0_i32_1 = arith.constant 0 : i32
    return %arg0, %c0_i32, %c0_i32_0 : i32, i32, i32
  }
  func.func @transform_15(%arg0: i32) -> (i32, i32) {
    %c0_i32 = arith.constant 0 : i32
    %c0_i32_0 = arith.constant 0 : i32
    %c0_i32_1 = arith.constant 0 : i32
    return %c0_i32, %c0_i32_0 : i32, i32
  }
}

</mosaic_0001>

<bundles_post_ra>
// kernel: aafm_encoder_forward.2
= control target key start
LH: loop header
LB: loop body
LE: loop exit
PB: predicated region body
PF: predicated region fallthrough
CT: control target
= control target key end

     0   :  { %vm104_vm0 = vcmask 1043456   ;;  %vm55_vm1 = vcmask 31744   ;;  %v895_v35 = vmov 0.0   ;;  %vm527_vm2 = vcmask 130048   ;;  %s1184_s1 = inlined_call_operand.vmem [shape: f32[4,64], index: 1, kind: input, shape index: {}]   ;;  %s1185_s0 = inlined_call_operand.vmem [shape: f32[128,4], index: 0, kind: input, shape index: {}]   ;;  %s1186_s6 = inlined_call_operand.vmem [shape: f32[16,512], index: 6, kind: input, shape index: {}]   ;;  %s1187_s3 = inlined_call_operand.vmem [shape: f32[64,2], index: 3, kind: input, shape index: {}]   ;;  %s1188_s5 = inlined_call_operand.vmem [shape: f32[16,16], index: 5, kind: input, shape index: {}]   ;;  %s1189_s2 = inlined_call_operand.vmem [shape: f32[1,64], index: 2, kind: input, shape index: {}]   ;;  %s1190_s7 = inlined_call_operand.vmem [shape: f32[1,512], index: 7, kind: input, shape index: {}]   ;;  %s1191_s9 = inlined_call_operand.vmem [shape: f32[16,512], index: 9, kind: output, shape index: {1}]   ;;  %s1192_s4 = inlined_call_operand.vmem [shape: f32[1,2], index: 4, kind: input, shape index: {}]   ;;  %s1193_s8 = inlined_call_operand.vmem [shape: f32[128,2], index: 8, kind: output, shape index: {0}]  }
   0x1   :  { %v47_v0 = vld [vmem:[%s1184_s1] sm:$0xf]  ;;  %v32_v2 = vld [vmem:[%s1185_s0 + $0x8] sm:$0xff]  ;;  %v33_v3 = vld [vmem:[%s1185_s0 + $0x10] sm:$0xff]  ;;  %vm284_vm3 = vcmask 523264   ;;  %vm478_vm4 = vcmask 15360  }
   0x2   :  { %v31_v1 = vld [vmem:[%s1185_s0] sm:$0xff]  ;;  %796 = vmatprep.subr.msk.mxu0 %vm104_vm0, %v47_v0  ;;  %v34_v4 = vld [vmem:[%s1185_s0 + $0x18] sm:$0xff]  ;;  %v498_v6 = vld [vmem:[%s1186_s6 + $0x8] sm:$0xff] }
   0x3   :  { %798 = vmatprep.mubr.msk.f32.mxu0 %vm55_vm1, %v31_v1  ;;  %797 = vmatpush3.msk.msra.mxu0 %vm104_vm0, %v47_v0  ;;  %v35_v5 = vld [vmem:[%s1185_s0 + $0x20] sm:$0xff]  ;;  %v502_v7 = vld [vmem:[%s1186_s6 + $0x28] sm:$0xff]  ;;  %v271_v14 = vld [vmem:[%s1187_s3 + $0x10] sm:$0xff] }
   0x4   :  { %799 = vmatmul.mubr.msk.f32.vlgmr.msra.gmra.mrb[0].mxu0 %vm55_vm1, %v32_v2  ;;  %v497_v8 = vld [vmem:[%s1186_s6] sm:$0xff]  ;;  %v878_v10 = vpack.c.bf16 %v502_v7, %v498_v6  ;;  %v270_v13 = vld [vmem:[%s1187_s3 + $0x8] sm:$0xff]  ;;  %v272_v17 = vld [vmem:[%s1187_s3 + $0x18] sm:$0xff] }
   0x5   :  { %801 = vmatprep.mubr.msk.f32.mxu0 %vm55_vm1, %v33_v3  ;;  %v501_v9 = vld [vmem:[%s1186_s6 + $0x20] sm:$0xff]  ;;  %v36_v15 = vld [vmem:[%s1185_s0 + $0x28] sm:$0xff]  ;;  %v37_v18 = vld [vmem:[%s1185_s0 + $0x30] sm:$0xff]  ;;  %v866_v19 = vpack.c.bf16 %v272_v17, %v271_v14 }
   0x6   :  { %v880_v11 = vpack.c.bf16 %v501_v9, %v497_v8  ;;  %v269_v12 = vld [vmem:[%s1187_s3] sm:$0xff]  ;;  %879 = vmatprep.subr.bf16.mxu0 %v878_v10  ;;  %v274_v21 = vld [vmem:[%s1187_s3 + $0x28] sm:$0xff]  ;;  %v38_v22 = vld [vmem:[%s1185_s0 + $0x38] sm:$0xff] }
   0x7   :  { %v862_v16 = vpack.c.bf16 %v270_v13, %v269_v12  ;;  %v273_v20 = vld [vmem:[%s1187_s3 + $0x20] sm:$0xff]  ;;  %v40_v25 = vld [vmem:[%s1185_s0 + $0x48] sm:$0xff]  ;;  %v41_v26 = vld [vmem:[%s1185_s0 + $0x50] sm:$0xff] }
   0x8   :  { %802 = vmatmul.mubr.msk.f32.gmra.mrb[2].mxu0 %vm55_vm1, %v34_v4  ;;  %v870_v23 = vpack.c.bf16 %v274_v21, %v273_v20  ;;  %v39_v24 = vld [vmem:[%s1185_s0 + $0x40] sm:$0xff]  ;;  %v42_v27 = vld [vmem:[%s1185_s0 + $0x58] sm:$0xff]  ;;  %v44_v29 = vld [vmem:[%s1185_s0 + $0x68] sm:$0xff] }
   0x9   :  { %804 = vmatprep.mubr.msk.f32.mxu0 %vm55_vm1, %v35_v5  ;;  %881 = vmatpush1.bf16.msra.mxu0 %v880_v11  ;;  %v43_v28 = vld [vmem:[%s1185_s0 + $0x60] sm:$0xff]  ;;  %v45_v30 = vld [vmem:[%s1185_s0 + $0x70] sm:$0xff]  ;;  %v46_v31 = vld [vmem:[%s1185_s0 + $0x78] sm:$0xff] }
   0xa   :  { %863 = vmatprep.subr.bf16.mxu1 %v862_v16  ;;  %v275_v32 = vld [vmem:[%s1187_s3 + $0x30] sm:$0xff]  ;;  %v276_v33 = vld [vmem:[%s1187_s3 + $0x38] sm:$0xff]  ;;  %v495_v36 = vld [vmem:[%s1188_s5] sm:$0xff] }
   0xb   :  { %865 = vmatpush3.bf16.msra.mxu1 %v862_v16  ;;  %v874_v34 = vpack.c.bf16 %v276_v33, %v275_v32  ;;  %v496_v37 = vld [vmem:[%s1188_s5 + $0x8] sm:$0xff]  ;;  %v500_v38 = vld [vmem:[%s1186_s6 + $0x18] sm:$0xff]  ;;  %v499_v41 = vld [vmem:[%s1186_s6 + $0x10] sm:$0xff] }
   0xc   :  { %805 = vmatmul.mubr.msk.f32.gmra.mrb[4].mxu0 %vm55_vm1, %v36_v15  ;;  %867 = vmatprep.subr.bf16.mxu1 %v866_v19  ;;  %v504_v39 = vld [vmem:[%s1186_s6 + $0x38] sm:$0xff]  ;;  %v503_v42 = vld [vmem:[%s1186_s6 + $0x30] sm:$0xff]  ;;  %v716_v44 = vld [vmem:[%s1189_s2] ss:$0 sm:$0xff] }
   0xd   :  { %807 = vmatprep.mubr.msk.f32.mxu0 %vm55_vm1, %v37_v18  ;;  %v882_v40 = vpack.c.bf16 %v504_v39, %v500_v38  ;;  %v884_v43 = vpack.c.bf16 %v503_v42, %v499_v41  ;;  %v505_v33 = vld [vmem:[%s1190_s7] sm:$0xf] }
   0xf   :  { %869 = vmatpush3.bf16.msra.mxu1 %v866_v19  ;;  %883 = vmatprep.subr.bf16.mxu0 %v882_v40 }
  0x10   :  { %808 = vmatmul.mubr.msk.f32.gmra.mrb[6].mxu0 %vm55_vm1, %v38_v22  ;;  %871 = vmatprep.subr.bf16.mxu1 %v870_v23 }
  0x11   :  { %810 = vmatprep.mubr.msk.f32.mxu0 %vm55_vm1, %v39_v24 }
  0x13   :  { %873 = vmatpush3.bf16.msra.mxu1 %v870_v23 }
  0x14   :  { %811 = vmatmul.mubr.msk.f32.gmra.mrb[8].mxu0 %vm55_vm1, %v40_v25  ;;  %875 = vmatprep.subr.bf16.mxu1 %v874_v34 }
  0x15   :  { %813 = vmatprep.mubr.msk.f32.mxu0 %vm55_vm1, %v41_v26 }
  0x17   :  { %877 = vmatpush3.bf16.msra.mxu1 %v874_v34 }
  0x18   :  { %814 = vmatmul.mubr.msk.f32.gmra.mrb[10].mxu0 %vm55_vm1, %v42_v27 }
  0x19   :  { %816 = vmatprep.mubr.msk.f32.mxu0 %vm55_vm1, %v43_v28 }
  0x1c   :  { %817 = vmatmul.mubr.msk.f32.gmra.mrb[12].mxu0 %vm55_vm1, %v44_v29  ;;  %v507_v29 = vlaneseq }
  0x1d   :  { %819 = vmatprep.mubr.msk.f32.mxu0 %vm55_vm1, %v45_v30 }
  0x1e   :  { %v508_v30 = vshrl.u32 %v507_v29, 7 }
  0x20   :  { %820 = vmatmul.mubr.msk.f32.gmra.mrb[14].mxu0 %vm55_vm1, %v46_v31  ;;  %v509_v31 = vsub.s32 0, %v508_v30  ;;  %v513_v32 = vsub.s32 1, %v508_v30 }
  0x21   :  { %598 = vmatprep.mubr.f32.mxu0 %v895_v35 }
  0x22   :  { %v510_v34 = vrot.slane %v505_v33, %v509_v31 }
  0x24   :  { %751 = vmatmul.mubr.msk.f32.vlgmr.msra.gmra.mrb[16].mxu0 %vm527_vm2, %v495_v36 }
  0x25   :  { %604 = vmatprep.mubr.f32.mxu0 %v895_v35  ;;  %885 = vmatpush1.bf16.msra.mxu0 %v884_v43 }
  0x28   :  { %752 = vmatmul.mubr.msk.f32.gmra.mrb[18].mxu0 %vm527_vm2, %v496_v37 }
  0x29   :  { %675 = vmatprep.mubr.f32.mxu0 %v895_v35 }
  0x2c   :  { %753 = vmatmul.mubr.msk.f32.vlgmr.msra.gmra.mrb[20].mxu0 %vm527_vm2, %v495_v36  ;;  %v514_v36 = vrot.slane %v505_v33, %v513_v32 }
  0x2d   :  { %681 = vmatprep.mubr.f32.mxu0 %v895_v35 }
  0x30   :  { %754 = vmatmul.mubr.msk.f32.gmra.mrb[22].mxu0 %vm527_vm2, %v496_v37 }
  0xd7   :  { %v800_v45 = vpop.f32.mrb[0].mxu0 }
  0xd8   :  { %v180_v46 = vadd.f32 %v800_v45, %v716_v44  ;;  %v174_v47 = vpop.f32.mrb[1].mxu0 }
  0xd9   :  { %v175_v48 = vadd.f32 %v716_v44, %v174_v47 }
  0xda   :  { %v254_v51 = vmax.f32 %v180_v46, 0.0 }
  0xdb   :  { %v253_v49 = vmax.f32 %v175_v48, 0.0  ;;  %v803_v50 = vpop.f32.mrb[2].mxu0  ;;  %v517_v48 = vsub.s32 2, %v508_v30 }
  0xdc   :  { %v190_v52 = vadd.f32 %v803_v50, %v716_v44  ;;  %v184_v53 = vpop.f32.mrb[3].mxu0 }
  0xdd   :  { %v185_v54 = vadd.f32 %v716_v44, %v184_v53  ;;  %838 = vmatprep.mubr.msk.f32.mxu1 %vm284_vm3, %v253_v49  ;;  %v521_v49 = vsub.s32 3, %v508_v30  ;;  %v518_v50 = vrot.slane %v505_v33, %v517_v48 }
  0xde   :  { %839 = vmatmul.mubr.msk.f32.vlgmr.msra.gmra.mrb[0].mxu1 %vm284_vm3, %v254_v51  ;;  %v256_v57 = vmax.f32 %v190_v52, 0.0 }
  0xdf   :  { %v255_v55 = vmax.f32 %v185_v54, 0.0  ;;  %v806_v56 = vpop.f32.mrb[4].mxu0  ;;  %v522_v52 = vrot.slane %v505_v33, %v521_v49 }
  0xe0   :  { %v200_v58 = vadd.f32 %v806_v56, %v716_v44  ;;  %v194_v59 = vpop.f32.mrb[5].mxu0 }
  0xe1   :  { %v195_v60 = vadd.f32 %v716_v44, %v194_v59  ;;  %841 = vmatprep.mubr.msk.f32.mxu1 %vm284_vm3, %v255_v55 }
  0xe2   :  { %842 = vmatmul.mubr.msk.f32.gmra.mrb[2].mxu1 %vm284_vm3, %v256_v57  ;;  %v258_v63 = vmax.f32 %v200_v58, 0.0 }
  0xe3   :  { %v257_v61 = vmax.f32 %v195_v60, 0.0  ;;  %v809_v62 = vpop.f32.mrb[6].mxu0 }
  0xe4   :  { %v210_v0 = vadd.f32 %v809_v62, %v716_v44  ;;  %v204_v1 = vpop.f32.mrb[7].mxu0 }
  0xe5   :  { %v205_v2 = vadd.f32 %v716_v44, %v204_v1  ;;  %844 = vmatprep.mubr.msk.f32.mxu1 %vm284_vm3, %v257_v61 }
  0xe6   :  { %845 = vmatmul.mubr.msk.f32.gmra.mrb[4].mxu1 %vm284_vm3, %v258_v63  ;;  %v260_v5 = vmax.f32 %v210_v0, 0.0 }
  0xe7   :  { %v259_v3 = vmax.f32 %v205_v2, 0.0  ;;  %v812_v4 = vpop.f32.mrb[8].mxu0 }
  0xe8   :  { %v220_v6 = vadd.f32 %v812_v4, %v716_v44  ;;  %v214_v7 = vpop.f32.mrb[9].mxu0  ;;  %v734_v4 = vld [vmem:[%s1192_s4] ss:$0 sm:$0xff] }
  0xe9   :  { %v215_v8 = vadd.f32 %v716_v44, %v214_v7  ;;  %847 = vmatprep.mubr.msk.f32.mxu1 %vm284_vm3, %v259_v3 }
  0xea   :  { %848 = vmatmul.mubr.msk.f32.gmra.mrb[6].mxu1 %vm284_vm3, %v260_v5  ;;  %v262_v11 = vmax.f32 %v220_v6, 0.0 }
  0xeb   :  { %v261_v9 = vmax.f32 %v215_v8, 0.0  ;;  %v815_v10 = vpop.f32.mrb[10].mxu0 }
  0xec   :  { %v230_v12 = vadd.f32 %v815_v10, %v716_v44  ;;  %v224_v13 = vpop.f32.mrb[11].mxu0 }
  0xed   :  { %v225_v14 = vadd.f32 %v716_v44, %v224_v13  ;;  %850 = vmatprep.mubr.msk.f32.mxu1 %vm284_vm3, %v261_v9 }
  0xee   :  { %851 = vmatmul.mubr.msk.f32.gmra.mrb[8].mxu1 %vm284_vm3, %v262_v11  ;;  %v264_v17 = vmax.f32 %v230_v12, 0.0 }
  0xef   :  { %v263_v15 = vmax.f32 %v225_v14, 0.0  ;;  %v818_v16 = vpop.f32.mrb[12].mxu0 }
  0xf0   :  { %v240_v18 = vadd.f32 %v818_v16, %v716_v44  ;;  %v234_v19 = vpop.f32.mrb[13].mxu0 }
  0xf1   :  { %v235_v20 = vadd.f32 %v716_v44, %v234_v19  ;;  %853 = vmatprep.mubr.msk.f32.mxu1 %vm284_vm3, %v263_v15 }
  0xf2   :  { %854 = vmatmul.mubr.msk.f32.gmra.mrb[10].mxu1 %vm284_vm3, %v264_v17  ;;  %v266_v23 = vmax.f32 %v240_v18, 0.0 }
  0xf3   :  { %v265_v21 = vmax.f32 %v235_v20, 0.0  ;;  %v821_v22 = vpop.f32.mrb[14].mxu0 }
  0xf4   :  { %v250_v24 = vadd.f32 %v821_v22, %v716_v44  ;;  %v244_v25 = vpop.f32.mrb[15].mxu0 }
  0xf5   :  { %v245_v26 = vadd.f32 %v716_v44, %v244_v25  ;;  %856 = vmatprep.mubr.msk.f32.mxu1 %vm284_vm3, %v265_v21 }
  0xf6   :  { %857 = vmatmul.mubr.msk.f32.gmra.mrb[12].mxu1 %vm284_vm3, %v266_v23  ;;  %v268_v28 = vmax.f32 %v250_v24, 0.0 }
  0xf7   :  { %v267_v27 = vmax.f32 %v245_v26, 0.0  ;;  %v600_v35 = vpop.f32.mrb[16].mxu0 }
  0xf8   :  { %v602_v37 = vpop.f32.mrb[17].mxu0  ;;  %v601_v38 = vadd.f32 %v600_v35, %v510_v34 }
  0xf9   :  { %859 = vmatprep.mubr.msk.f32.mxu1 %vm284_vm3, %v267_v27  ;;  %v603_v39 = vadd.f32 %v602_v37, %v514_v36 }
  0xfa   :  { %860 = vmatmul.mubr.msk.f32.gmra.mrb[14].mxu1 %vm284_vm3, %v268_v28  ;;  %v688_v40 = vmul.f32 1.442695, %v601_v38 }
  0xfb   :  { %v690_v41 = vmul.f32 1.442695, %v603_v39  ;;  %v606_v42 = vpop.f32.mrb[18].mxu0 }
  0xfc   :  { %v608_v43 = vpop.f32.mrb[19].mxu0  ;;  %887 = vpow2.f32 %v688_v40  ;;  %v607_v44 = vadd.f32 %v606_v42, %v510_v34 }
  0xfd   :  { %v609_v45 = vadd.f32 %v608_v43, %v514_v36  ;;  %889 = vpow2.f32 %v690_v41 }
  0xfe   :  { %v692_v46 = vmul.f32 1.442695, %v607_v44 }
  0xff   :  { %v694_v47 = vmul.f32 1.442695, %v609_v45  ;;  %v677_v51 = vpop.f32.mrb[20].mxu0 }
 0x100   :  { %891 = vpow2.f32 %v692_v46  ;;  %v679_v53 = vpop.f32.mrb[21].mxu0  ;;  %v678_v54 = vadd.f32 %v677_v51, %v518_v50 }
 0x101   :  { %893 = vpow2.f32 %v694_v47  ;;  %v680_v55 = vadd.f32 %v679_v53, %v522_v52 }
 0x103   :  { %v683_v59 = vpop.f32.mrb[22].mxu0 }
 0x104   :  { %v685_v61 = vpop.f32.mrb[23].mxu0  ;;  %v684_v62 = vadd.f32 %v683_v59, %v518_v50 }
 0x105   :  { %v686_v63 = vadd.f32 %v685_v61, %v522_v52 }
 0x106   :  { %v888_v56 = vpop.eup %887 }
 0x107   :  { %v890_v57 = vpop.eup %889  ;;  %702 = vst [vmem:[%s1191_s9 + $0x10] sm:$0xff] %v888_v56  ;;  %v696_v58 = vmul.f32 %v888_v56, %v678_v54 }
 0x108   :  { %703 = vst [vmem:[%s1191_s9 + $0x18] sm:$0xff] %v890_v57  ;;  %v697_v60 = vmul.f32 %v890_v57, %v680_v55 }
 0x109   :  { %700 = vst [vmem:[%s1191_s9] sm:$0xff] %v696_v58 }
 0x10a   :  { %v892_v0 = vpop.eup %891  ;;  %701 = vst [vmem:[%s1191_s9 + $0x8] sm:$0xff] %v697_v60 }
 0x10b   :  { %v894_v1 = vpop.eup %893  ;;  %706 = vst [vmem:[%s1191_s9 + $0x30] sm:$0xff] %v892_v0  ;;  %v698_v2 = vmul.f32 %v892_v0, %v684_v62 }
 0x10c   :  { %707 = vst [vmem:[%s1191_s9 + $0x38] sm:$0xff] %v894_v1  ;;  %v699_v3 = vmul.f32 %v894_v1, %v686_v63 }
 0x10d   :  { %704 = vst [vmem:[%s1191_s9 + $0x20] sm:$0xff] %v698_v2 }
 0x10e   :  { %705 = vst [vmem:[%s1191_s9 + $0x28] sm:$0xff] %v699_v3 }
 0x1b1   :  { %v840_v5 = vpop.f32.mrb[0].mxu1 }
 0x1b2   :  { %v405_v6 = vadd.f32 %v840_v5, %v734_v4  ;;  %v399_v7 = vpop.f32.mrb[1].mxu1 }
 0x1b3   :  { %v400_v8 = vadd.f32 %v734_v4, %v399_v7 }
 0x1b4   :  { %480 = vst.msk [vmem:[%s1193_s8 + $0x8] sm:$0xff] %vm478_vm4, %v405_v6 }
 0x1b5   :  { %479 = vst.msk [vmem:[%s1193_s8] sm:$0xff] %vm478_vm4, %v400_v8  ;;  %v843_v9 = vpop.f32.mrb[2].mxu1 }
 0x1b6   :  { %v415_v10 = vadd.f32 %v843_v9, %v734_v4  ;;  %v409_v11 = vpop.f32.mrb[3].mxu1 }
 0x1b7   :  { %v410_v12 = vadd.f32 %v734_v4, %v409_v11 }
 0x1b8   :  { %482 = vst.msk [vmem:[%s1193_s8 + $0x18] sm:$0xff] %vm478_vm4, %v415_v10 }
 0x1b9   :  { %481 = vst.msk [vmem:[%s1193_s8 + $0x10] sm:$0xff] %vm478_vm4, %v410_v12  ;;  %v846_v13 = vpop.f32.mrb[4].mxu1 }
 0x1ba   :  { %v425_v14 = vadd.f32 %v846_v13, %v734_v4  ;;  %v419_v15 = vpop.f32.mrb[5].mxu1 }
 0x1bb   :  { %v420_v16 = vadd.f32 %v734_v4, %v419_v15 }
 0x1bc   :  { %484 = vst.msk [vmem:[%s1193_s8 + $0x28] sm:$0xff] %vm478_vm4, %v425_v14 }
 0x1bd   :  { %483 = vst.msk [vmem:[%s1193_s8 + $0x20] sm:$0xff] %vm478_vm4, %v420_v16  ;;  %v849_v17 = vpop.f32.mrb[6].mxu1 }
 0x1be   :  { %v435_v18 = vadd.f32 %v849_v17, %v734_v4  ;;  %v429_v19 = vpop.f32.mrb[7].mxu1 }
 0x1bf   :  { %v430_v20 = vadd.f32 %v734_v4, %v429_v19 }
 0x1c0   :  { %486 = vst.msk [vmem:[%s1193_s8 + $0x38] sm:$0xff] %vm478_vm4, %v435_v18 }
 0x1c1   :  { %485 = vst.msk [vmem:[%s1193_s8 + $0x30] sm:$0xff] %vm478_vm4, %v430_v20  ;;  %v852_v21 = vpop.f32.mrb[8].mxu1 }
 0x1c2   :  { %v445_v22 = vadd.f32 %v852_v21, %v734_v4  ;;  %v439_v23 = vpop.f32.mrb[9].mxu1 }
 0x1c3   :  { %v440_v24 = vadd.f32 %v734_v4, %v439_v23 }
 0x1c4   :  { %488 = vst.msk [vmem:[%s1193_s8 + $0x48] sm:$0xff] %vm478_vm4, %v445_v22 }
 0x1c5   :  { %487 = vst.msk [vmem:[%s1193_s8 + $0x40] sm:$0xff] %vm478_vm4, %v440_v24  ;;  %v855_v25 = vpop.f32.mrb[10].mxu1 }
 0x1c6   :  { %v455_v26 = vadd.f32 %v855_v25, %v734_v4  ;;  %v449_v27 = vpop.f32.mrb[11].mxu1 }
 0x1c7   :  { %v450_v28 = vadd.f32 %v734_v4, %v449_v27 }
 0x1c8   :  { %490 = vst.msk [vmem:[%s1193_s8 + $0x58] sm:$0xff] %vm478_vm4, %v455_v26 }
 0x1c9   :  { %489 = vst.msk [vmem:[%s1193_s8 + $0x50] sm:$0xff] %vm478_vm4, %v450_v28  ;;  %v858_v29 = vpop.f32.mrb[12].mxu1 }
 0x1ca   :  { %v465_v30 = vadd.f32 %v858_v29, %v734_v4  ;;  %v459_v31 = vpop.f32.mrb[13].mxu1 }
 0x1cb   :  { %v460_v32 = vadd.f32 %v734_v4, %v459_v31 }
 0x1cc   :  { %492 = vst.msk [vmem:[%s1193_s8 + $0x68] sm:$0xff] %vm478_vm4, %v465_v30 }
 0x1cd   :  { %491 = vst.msk [vmem:[%s1193_s8 + $0x60] sm:$0xff] %vm478_vm4, %v460_v32  ;;  %v861_v33 = vpop.f32.mrb[14].mxu1 }
 0x1ce   :  { %v475_v34 = vadd.f32 %v861_v33, %v734_v4  ;;  %v469_v35 = vpop.f32.mrb[15].mxu1 }
 0x1cf   :  { %v470_v36 = vadd.f32 %v734_v4, %v469_v35 }
 0x1d0   :  { %494 = vst.msk [vmem:[%s1193_s8 + $0x78] sm:$0xff] %vm478_vm4, %v475_v34 }
 0x1d1   :  { %493 = vst.msk [vmem:[%s1193_s8 + $0x70] sm:$0xff] %vm478_vm4, %v470_v36 }

// kernel: aafm_encoder_forward.3
= control target key start
LH: loop header
LB: loop body
LE: loop exit
PB: predicated region body
PF: predicated region fallthrough
CT: control target
= control target key end

     0   :  { %s2049_s18 = smov 0   ;;  %s2271_s0 = inlined_call_operand.vmem [shape: f32[16,128], index: 0, kind: input, shape index: {}]   ;;  %s2272_s1 = inlined_call_operand.vmem [shape: f32[2,16,8], index: 1, kind: input, shape index: {}]   ;;  %s2273_s2 = inlined_call_operand.vmem [shape: f32[2,16,256], index: 2, kind: input, shape index: {}]   ;;  %s2274_s3 = inlined_call_operand.vmem [shape: f32[2,128,128], index: 3, kind: input, shape index: {}]   ;;  %s2275_s4 = inlined_call_operand.vmem [shape: f32[2,1,128], index: 4, kind: input, shape index: {}]   ;;  %s2276_s5 = inlined_call_operand.vmem [shape: f32[2,128,128], index: 5, kind: input, shape index: {}]   ;;  %s2277_s6 = inlined_call_operand.vmem [shape: f32[2,1,128], index: 6, kind: input, shape index: {}]   ;;  %s2278_s7 = inlined_call_operand.vmem [shape: f32[2,128,128], index: 7, kind: input, shape index: {}]   ;;  %s2279_s8 = inlined_call_operand.vmem [shape: f32[2,1,128], index: 8, kind: input, shape index: {}]   ;;  %s2280_s9 = inlined_call_operand.vmem [shape: f32[2,128,128], index: 9, kind: input, shape index: {}]   ;;  %s2281_s10 = inlined_call_operand.vmem [shape: f32[2,1,128], index: 10, kind: input, shape index: {}]   ;;  %s2282_s11 = inlined_call_operand.vmem [shape: f32[2,1,128], index: 11, kind: input, shape index: {}]   ;;  %s2283_s12 = inlined_call_operand.vmem [shape: f32[2,1,128], index: 12, kind: input, shape index: {}]   ;;  %s2284_s13 = inlined_call_operand.vmem [shape: f32[2,1,128], index: 13, kind: input, shape index: {}]   ;;  %s2285_s14 = inlined_call_operand.vmem [shape: f32[2,1,128], index: 14, kind: input, shape index: {}]   ;;  %s2286_s15 = inlined_call_operand.vmem [shape: f32[16,128], index: 15, kind: output, shape index: {}]  }
   0x1   :  { %2291 = sst [smem:[#allocation5_spill]] %s2271_s0 }
   0x2   :  { %2292 = sst [smem:[#allocation6_spill]] %s2272_s1 }
   0x3   :  { %2293 = sst [smem:[#allocation7_spill]] %s2273_s2 }
   0x4   :  { %2294 = sst [smem:[#allocation8_spill]] %s2274_s3 }
   0x5   :  { %2295 = sst [smem:[#allocation9_spill]] %s2276_s5 }
   0x6   :  { %2296 = sst [smem:[#allocation10_spill]] %s2278_s7 }
   0x7   :  { %2297 = sst [smem:[#allocation11_spill]] %s2280_s9 }
   0x8   :  { %2298 = sst [smem:[#allocation12_spill]] %s2285_s14 }
   0x9   :  { %2299 = sst [smem:[#allocation13_spill]] %s2286_s15 }
   0xa LB: > { %2300 = sst [smem:[#allocation3_spill]] %s1966_s18  ;;  %s2055_s19 = sadd.s32 4294967295, %s1966_s18   ;;  %s1966_s18 = sphi %s2049_s18, %s25_s18  }
   0xb   : > { %2301 = sst [smem:[#allocation4_spill]] %s2055_s19  ;;  %p1552_p0 = scmp.ge.s32.totalorder %s1966_s18, 1 }
   0xc   : > { %p546_p1 = scmp.lt.s32.totalorder %s1966_s18, 3 }
   0xe   : > { %p547_p2 = pnand %p1552_p0, %p546_p1 }
   0xf   : > { %p638_p3 = scmp.lt.s32.totalorder (!%p547_p2), %s2055_s19, 1  ;;  %s2302_s1 = sld [smem:[#allocation6_spill]] (!%p547_p2) }
  0x10   : > { %550 = sbr.rel (%p547_p2) target bundleno = 1185 (0x4a1), region = 80  ;;  %s2303_s2 = sld [smem:[#allocation7_spill]] (!%p547_p2) }
  0x11   : > { %s2304_s3 = sld [smem:[#allocation8_spill]] (!%p547_p2)  ;;  %s2305_s5 = sld [smem:[#allocation9_spill]] (!%p547_p2) }
  0x12   : > { %s2306_s7 = sld [smem:[#allocation10_spill]] (!%p547_p2)  ;;  %s2307_s9 = sld [smem:[#allocation11_spill]] (!%p547_p2) }
  0x17   : > { %s2061_s20 = scalar_select %p638_p3, %s2055_s19, 1 }
  0x19   : > { %s1581_s21 = sshll.u32 %s2061_s20, 4  ;;  %s1582_s22 = sshll.u32 %s2061_s20, 5 }
  0x1a   : > { %s642_s25 = scalar_lea.vmem %s2302_s1, %s1581_s21  ;;  %s2071_s28 = scalar_lea.vmem %s2303_s2, %s1582_s22 }
  0x1b   : > { %s1583_s29 = sshll.u32 %s2061_s20, 7  ;;  %s682_s22 = scalar_lea.vmem %s2282_s11, %s2061_s20 }
  0x1c   : > { %s2081_s0 = scalar_lea.vmem %s2304_s3, %s1583_s29  ;;  %s2086_s23 = scalar_lea.vmem %s2305_s5, %s1583_s29 }
  0x1d   : > { %s2095_s1 = scalar_lea.vmem %s2306_s7, %s1583_s29  ;;  %s2104_s2 = scalar_lea.vmem %s2307_s9, %s1583_s29 }
  0x1e   : > { %s685_s5 = scalar_lea.vmem %s2283_s12, %s2061_s20  ;;  %s688_s16 = scalar_lea.vmem %s2284_s13, %s2061_s20 }
  0x1f   : > { %s2308_s29 = sld [smem:[#allocation12_spill]]  ;;  %s2309_s9 = sld [smem:[#allocation4_spill]] }
  0x25   : > { %s691_s18 = scalar_lea.vmem %s2308_s29, %s2061_s20  ;;  %p1565_p4 = scmp.ne.s32.totalorder %s2309_s9, 0 }
  0x26   : > { %s2310_s3 = sld [smem:[#allocation5_spill]] (!%p1565_p4) }
  0x27   : > { %695 = sbr.rel (%p1565_p4) target bundleno = 46 (0x2e), region = 84 }
  0x2c   : > { %v696_v0 = vld [vmem:[%s2310_s3] sm:$0xff] (!%p1565_p4)  ;;  %v697_v1 = vld [vmem:[%s2310_s3 + $0x8] sm:$0xff] (!%p1565_p4) }
  0x2d   : > { %698 = vst [vmem:[#allocation2] sm:$0xff] (!%p1565_p4), %v696_v0  ;;  %699 = vst [vmem:[#allocation2 + $0x8] sm:$0xff] (!%p1565_p4), %v697_v1 }
  0x2e PF: > { %v2133_v2 = vld [vmem:[%s642_s25] sm:$0xff]  ;;  %vm814_vm0 = vcmask 64512   ;;  %v2135_v3 = vld [vmem:[%s642_s25 + $0x8] sm:$0xff]  ;;  %v704_v7 = vld [vmem:[%s2081_s0 + $0x10] sm:$0xff]  ;;  %v1968_v30 = vmov 0.0   ;;  %s2311_s9 = scalar_lea.vmem %s2275_s4, %s2061_s20  ;;  %s2313_s30 = scalar_lea.vmem %s2279_s8, %s2061_s20 }
  0x2f   : > { %v702_v4 = vld [vmem:[%s2081_s0] sm:$0xff]  ;;  %v815_v5 = vsel %vm814_vm0, %v2133_v2, -inf  ;;  %v703_v6 = vld [vmem:[%s2081_s0 + $0x8] sm:$0xff]  ;;  %v705_v8 = vld [vmem:[%s2081_s0 + $0x18] sm:$0xff]  ;;  %v818_v11 = vsel %vm814_vm0, %v2135_v3, -inf  ;;  %972 = vmatprep.mubr.f32.mxu1 %v1968_v30  ;;  %s2314_s29 = scalar_lea.vmem %s2281_s10, %s2061_s20  ;;  %s2316_s7 = sld [smem:[#allocation4_spill]] }
  0x30   : > { %816 = vmax.xlane.f32.xlu0 %v815_v5  ;;  %v1799_v9 = vpack.c.bf16 %v703_v6, %v702_v4  ;;  %v1803_v10 = vpack.c.bf16 %v705_v8, %v704_v7  ;;  %v706_v12 = vld [vmem:[%s2081_s0 + $0x20] sm:$0xff]  ;;  %v707_v13 = vld [vmem:[%s2081_s0 + $0x28] sm:$0xff]  ;;  %v708_v15 = vld [vmem:[%s2081_s0 + $0x30] sm:$0xff] }
  0x31   : > { %v1807_v14 = vpack.c.bf16 %v707_v13, %v706_v12  ;;  %v709_v16 = vld [vmem:[%s2081_s0 + $0x38] sm:$0xff]  ;;  %v710_v18 = vld [vmem:[%s2081_s0 + $0x40] sm:$0xff]  ;;  %v711_v19 = vld [vmem:[%s2081_s0 + $0x48] sm:$0xff] }
  0x32   : > { %1800 = vmatprep.subr.bf16.mxu0 %v1799_v9  ;;  %v1811_v17 = vpack.c.bf16 %v709_v16, %v708_v15  ;;  %v1815_v20 = vpack.c.bf16 %v711_v19, %v710_v18  ;;  %v712_v22 = vld [vmem:[%s2081_s0 + $0x50] sm:$0xff]  ;;  %v713_v23 = vld [vmem:[%s2081_s0 + $0x58] sm:$0xff]  ;;  %v714_v25 = vld [vmem:[%s2081_s0 + $0x60] sm:$0xff] }
  0x33   : > { %1802 = vmatpush3.bf16.msra.mxu0 %v1799_v9  ;;  %v1819_v24 = vpack.c.bf16 %v713_v23, %v712_v22  ;;  %v715_v26 = vld [vmem:[%s2081_s0 + $0x68] sm:$0xff]  ;;  %v716_v28 = vld [vmem:[%s2081_s0 + $0x70] sm:$0xff]  ;;  %v717_v29 = vld [vmem:[%s2081_s0 + $0x78] sm:$0xff] }
  0x34   : > { %819 = vmax.xlane.f32.xlu0 %v818_v11  ;;  %1804 = vmatprep.subr.bf16.mxu0 %v1803_v10  ;;  %v2151_v21 = vld [vmem:[#allocation2] sm:$0xff]  ;;  %v1823_v27 = vpack.c.bf16 %v715_v26, %v714_v25  ;;  %v1827_v31 = vpack.c.bf16 %v717_v29, %v716_v28  ;;  %v828_v32 = vld [vmem:[%s2071_s28 + $0x8] sm:$0xff]  ;;  %v830_v33 = vld [vmem:[%s2071_s28 + $0x18] sm:$0xff] }
  0x35   : > { %1691 = vmatprep.mubr.f32.mxu0 %v2151_v21  ;;  %v829_v34 = vld [vmem:[%s2071_s28 + $0x10] sm:$0xff]  ;;  %908 = vmatprep.subr.mxu1 %v830_v33  ;;  %v2163_v35 = vld [vmem:[#allocation2 + $0x8] sm:$0xff]  ;;  %v827_v36 = vld [vmem:[%s2071_s28] sm:$0xff]  ;;  %s2312_s28 = scalar_lea.vmem %s2277_s6, %s2061_s20  ;;  %p1578_p5 = scmp.ne.s32.totalorder %s2316_s7, 1 }
  0x36   : > { %909 = vmatpush1.msra.mxu1 %v829_v34  ;;  %v985_v37 = vld [vmem:[%s2086_s23] sm:$0xff]  ;;  %v986_v38 = vld [vmem:[%s2086_s23 + $0x8] sm:$0xff]  ;;  %v987_v47 = vld [vmem:[%s2086_s23 + $0x10] sm:$0xff]  ;;  %s2317_s25 = sld [smem:[#allocation13_spill]] (!%p1578_p5) }
  0x37   : > { %1806 = vmatpush3.bf16.msra.mxu0 %v1803_v10  ;;  %v1831_v39 = vpack.c.bf16 %v986_v38, %v985_v37  ;;  %v988_v48 = vld [vmem:[%s2086_s23 + $0x18] sm:$0xff]  ;;  %v989_v51 = vld [vmem:[%s2086_s23 + $0x20] sm:$0xff]  ;;  %v990_v52 = vld [vmem:[%s2086_s23 + $0x28] sm:$0xff] }
  0x38   : > { %1808 = vmatprep.subr.bf16.mxu0 %v1807_v14  ;;  %v1835_v49 = vpack.c.bf16 %v988_v48, %v987_v47  ;;  %v1839_v53 = vpack.c.bf16 %v990_v52, %v989_v51  ;;  %v991_v54 = vld [vmem:[%s2086_s23 + $0x30] sm:$0xff]  ;;  %v992_v55 = vld [vmem:[%s2086_s23 + $0x38] sm:$0xff]  ;;  %v993_v57 = vld [vmem:[%s2086_s23 + $0x40] sm:$0xff] }
  0x39   : > { %1832 = vmatprep.subr.bf16.mxu1 %v1831_v39  ;;  %v1843_v56 = vpack.c.bf16 %v992_v55, %v991_v54  ;;  %v994_v58 = vld [vmem:[%s2086_s23 + $0x48] sm:$0xff]  ;;  %v995_v62 = vld [vmem:[%s2086_s23 + $0x50] sm:$0xff]  ;;  %v996_v63 = vld [vmem:[%s2086_s23 + $0x58] sm:$0xff] }
  0x3a   : > { %v1847_v59 = vpack.c.bf16 %v994_v58, %v993_v57  ;;  %v997_v0 = vld [vmem:[%s2086_s23 + $0x60] sm:$0xff]  ;;  %v1851_v1 = vpack.c.bf16 %v996_v63, %v995_v62  ;;  %v999_v4 = vld [vmem:[%s2086_s23 + $0x70] sm:$0xff]  ;;  %v1000_v5 = vld [vmem:[%s2086_s23 + $0x78] sm:$0xff] }
  0x3b   : > { %1810 = vmatpush3.bf16.msra.mxu0 %v1807_v14  ;;  %v1859_v6 = vpack.c.bf16 %v1000_v5, %v999_v4  ;;  %v1566_v7 = vld [vmem:[%s2311_s9] ss:$0 sm:$0xff]  ;;  %v1132_v33 = vld [vmem:[%s2095_s1 + $0x18] sm:$0xff]  ;;  %v1134_v37 = vld [vmem:[%s2095_s1 + $0x28] sm:$0xff] }
  0x3c   : > { %1812 = vmatprep.subr.bf16.mxu0 %v1811_v17  ;;  %v1129_v29 = vld [vmem:[%s2095_s1] sm:$0xff]  ;;  %v1143_v51 = vld [vmem:[%s2095_s1 + $0x70] sm:$0xff]  ;;  %v1144_v52 = vld [vmem:[%s2095_s1 + $0x78] sm:$0xff] }
  0x3d   : > { %v1141_v48 = vld [vmem:[%s2095_s1 + $0x60] sm:$0xff]  ;;  %v1238_v55 = vld [vmem:[%s2104_s2 + $0x8] sm:$0xff]  ;;  %v1240_v58 = vld [vmem:[%s2104_s2 + $0x18] sm:$0xff] }
  0x3e   : > { %v1237_v54 = vld [vmem:[%s2104_s2] sm:$0xff] }
  0x3f   : > { %1814 = vmatpush3.bf16.msra.mxu0 %v1811_v17  ;;  %v1895_v57 = vpack.c.bf16 %v1238_v55, %v1237_v54  ;;  %v1571_v63 = vld [vmem:[%s2312_s28] ss:$0 sm:$0xff] }
  0x40   : > { %1816 = vmatprep.subr.bf16.mxu0 %v1815_v20 }
  0x43   : > { %1818 = vmatpush3.bf16.msra.mxu0 %v1815_v20 }
  0x44   : > { %1820 = vmatprep.subr.bf16.mxu0 %v1819_v24 }
  0x47   : > { %1822 = vmatpush3.bf16.msra.mxu0 %v1819_v24 }
  0x48   : > { %1824 = vmatprep.subr.bf16.mxu0 %v1823_v27 }
  0x4b   : > { %1826 = vmatpush3.bf16.msra.mxu0 %v1823_v27 }
  0x4c   : > { %1828 = vmatprep.subr.bf16.mxu0 %v1827_v31 }
  0x4f   : > { %1830 = vmatpush3.bf16.msra.mxu0 %v1827_v31 }
  0x50   : > { %834 = vmatprep.subr.mxu0 %v828_v32  ;;  %v1131_v32 = vld [vmem:[%s2095_s1 + $0x10] sm:$0xff] }
  0x51   : > { %v1867_v34 = vpack.c.bf16 %v1132_v33, %v1131_v32  ;;  %v1573_v32 = vld [vmem:[%s685_s5] ss:$0 sm:$0xff] }
  0x52   : > { %1692 = vmatmul.mubr.f32.vlgmr.msra.gmra.mrb[0].mxu0 %v2163_v35 }
  0x53   : > { %835 = vmatpush1.msra.mxu0 %v827_v36  ;;  %898 = vmatprep.mubr.f32.mxu0 %v1968_v30  ;;  %v1130_v30 = vld [vmem:[%s2095_s1 + $0x8] sm:$0xff]  ;;  %v1133_v36 = vld [vmem:[%s2095_s1 + $0x20] sm:$0xff] }
  0x54   : > { %v1863_v31 = vpack.c.bf16 %v1130_v30, %v1129_v29  ;;  %v1871_v38 = vpack.c.bf16 %v1134_v37, %v1133_v36  ;;  %v1572_v29 = vld [vmem:[%s682_s22] ss:$0 sm:$0xff] }
  0x56   : > { %1864 = vmatprep.subr.bf16.mxu0 %v1863_v31 }
  0xbd   : > { %v817_v40 = vpop.xlane.xlu0 %816 }
  0xbe   : > { %v821_v41 = vsub.f32 %v2133_v2, %v817_v40  ;;  %v998_v2 = vld [vmem:[%s2086_s23 + $0x68] sm:$0xff]  ;;  %v1136_v40 = vld [vmem:[%s2095_s1 + $0x38] sm:$0xff] }
  0xc0   : > { %v823_v42 = vmul.f32 1.442695, %v821_v41 }
  0xc1   : > { %v820_v43 = vpop.xlane.xlu0 %819 }
  0xc2   : > { %1936 = vpow2.f32 %v823_v42  ;;  %v822_v44 = vsub.f32 %v2135_v3, %v820_v43  ;;  %v1855_v3 = vpack.c.bf16 %v998_v2, %v997_v0  ;;  %v1137_v42 = vld [vmem:[%s2095_s1 + $0x40] sm:$0xff]  ;;  %v1138_v43 = vld [vmem:[%s2095_s1 + $0x48] sm:$0xff] }
  0xc4   : > { %v825_v45 = vmul.f32 1.442695, %v822_v44  ;;  %v1879_v44 = vpack.c.bf16 %v1138_v43, %v1137_v42  ;;  %v1246_v42 = vld [vmem:[%s2104_s2 + $0x48] sm:$0xff] }
  0xc6   : > { %1938 = vpow2.f32 %v825_v45  ;;  %v1139_v45 = vld [vmem:[%s2095_s1 + $0x50] sm:$0xff] }
  0xcc   : > { %v1937_v46 = vpop.eup %1936 }
  0xcd   : > { %1569 = vmatmul.mubr.msk.f32.vlgmr.msra.gmra.mrb[2].mxu0 %vm814_vm0, %v1937_v46  ;;  %v1140_v46 = vld [vmem:[%s2095_s1 + $0x58] sm:$0xff] }
  0xce   : > { %1866 = vmatpush3.bf16.msra.mxu0 %v1863_v31  ;;  %v1883_v47 = vpack.c.bf16 %v1140_v46, %v1139_v45  ;;  %v1248_v45 = vld [vmem:[%s2104_s2 + $0x58] sm:$0xff] }
  0xcf   : > { %1868 = vmatprep.subr.bf16.mxu0 %v1867_v34 }
  0xd0   : > { %v1939_v50 = vpop.eup %1938 }
  0xd1   : > { %1570 = vmatmul.mubr.msk.f32.vlgmr.msra.gmra.mrb[0].mxu1 %vm814_vm0, %v1939_v50 }
  0xd2   : > { %1834 = vmatpush3.bf16.msra.mxu1 %v1831_v39  ;;  %1870 = vmatpush3.bf16.msra.mxu0 %v1867_v34  ;;  %v1135_v39 = vld [vmem:[%s2095_s1 + $0x30] sm:$0xff] }
  0xd3   : > { %1836 = vmatprep.subr.bf16.mxu1 %v1835_v49  ;;  %1872 = vmatprep.subr.bf16.mxu0 %v1871_v38  ;;  %v1875_v41 = vpack.c.bf16 %v1136_v40, %v1135_v39  ;;  %v1244_v39 = vld [vmem:[%s2104_s2 + $0x38] sm:$0xff] }
  0xd6   : > { %1838 = vmatpush3.bf16.msra.mxu1 %v1835_v49  ;;  %1874 = vmatpush3.bf16.msra.mxu0 %v1871_v38  ;;  %v1142_v49 = vld [vmem:[%s2095_s1 + $0x68] sm:$0xff]  ;;  %v1243_v38 = vld [vmem:[%s2104_s2 + $0x30] sm:$0xff] }
  0xd7   : > { %1840 = vmatprep.subr.bf16.mxu1 %v1839_v53  ;;  %1876 = vmatprep.subr.bf16.mxu0 %v1875_v41  ;;  %v1887_v50 = vpack.c.bf16 %v1142_v49, %v1141_v48  ;;  %v1907_v40 = vpack.c.bf16 %v1244_v39, %v1243_v38  ;;  %v1250_v48 = vld [vmem:[%s2104_s2 + $0x68] sm:$0xff]  ;;  %v1577_v38 = vld [vmem:[%s691_s18] ss:$0 sm:$0xff] }
  0xda   : > { %1842 = vmatpush3.bf16.msra.mxu1 %v1839_v53  ;;  %1878 = vmatpush3.bf16.msra.mxu0 %v1875_v41  ;;  %v1891_v53 = vpack.c.bf16 %v1144_v52, %v1143_v51  ;;  %v1245_v41 = vld [vmem:[%s2104_s2 + $0x40] sm:$0xff]  ;;  %v1252_v51 = vld [vmem:[%s2104_s2 + $0x78] sm:$0xff] }
  0xdb   : > { %1844 = vmatprep.subr.bf16.mxu1 %v1843_v56  ;;  %1880 = vmatprep.subr.bf16.mxu0 %v1879_v44  ;;  %v1911_v43 = vpack.c.bf16 %v1246_v42, %v1245_v41 }
  0xde   : > { %1846 = vmatpush3.bf16.msra.mxu1 %v1843_v56  ;;  %1882 = vmatpush3.bf16.msra.mxu0 %v1879_v44  ;;  %v1239_v56 = vld [vmem:[%s2104_s2 + $0x10] sm:$0xff] }
  0xdf   : > { %1848 = vmatprep.subr.bf16.mxu1 %v1847_v59  ;;  %1884 = vmatprep.subr.bf16.mxu0 %v1883_v47  ;;  %v1247_v44 = vld [vmem:[%s2104_s2 + $0x50] sm:$0xff] }
  0xe0   : > { %v1915_v46 = vpack.c.bf16 %v1248_v45, %v1247_v44 }
  0xe2   : > { %1850 = vmatpush3.bf16.msra.mxu1 %v1847_v59  ;;  %1886 = vmatpush3.bf16.msra.mxu0 %v1883_v47  ;;  %v1899_v59 = vpack.c.bf16 %v1240_v58, %v1239_v56  ;;  %v1249_v47 = vld [vmem:[%s2104_s2 + $0x60] sm:$0xff] }
  0xe3   : > { %1852 = vmatprep.subr.bf16.mxu1 %v1851_v1  ;;  %1888 = vmatprep.subr.bf16.mxu0 %v1887_v50  ;;  %v1919_v49 = vpack.c.bf16 %v1250_v48, %v1249_v47 }
  0xe6   : > { %1854 = vmatpush3.bf16.msra.mxu1 %v1851_v1  ;;  %1890 = vmatpush3.bf16.msra.mxu0 %v1887_v50  ;;  %v1251_v50 = vld [vmem:[%s2104_s2 + $0x70] sm:$0xff] }
  0xe7   : > { %1856 = vmatprep.subr.bf16.mxu1 %v1855_v3  ;;  %1892 = vmatprep.subr.bf16.mxu0 %v1891_v53  ;;  %v1923_v52 = vpack.c.bf16 %v1252_v51, %v1251_v50 }
  0xea   : > { %1858 = vmatpush3.bf16.msra.mxu1 %v1855_v3  ;;  %1894 = vmatpush3.bf16.msra.mxu0 %v1891_v53  ;;  %v1574_v53 = vld [vmem:[%s2313_s30] ss:$0 sm:$0xff] }
  0xeb   : > { %1860 = vmatprep.subr.bf16.mxu1 %v1859_v6 }
  0xee   : > { %1862 = vmatpush3.bf16.msra.mxu1 %v1859_v6 }
  0xef   : > { %1896 = vmatprep.subr.bf16.mxu1 %v1895_v57 }
 0x125   : > { %v1693_v60 = vpop.f32.mrb[0].mxu0 }
 0x126   : > { %v791_v61 = vpop.f32.mrb[1].mxu0  ;;  %v797_v10 = vadd.f32 %v1693_v60, %v1566_v7  ;;  %v1241_v60 = vld [vmem:[%s2104_s2 + $0x20] sm:$0xff] }
 0x127   : > { %v792_v8 = vadd.f32 %v1566_v7, %v791_v61  ;;  %v1242_v61 = vld [vmem:[%s2104_s2 + $0x28] sm:$0xff] }
 0x128   : > { %v1568_v11 = vmul.f32 -1.442695, %v797_v10  ;;  %v1903_v62 = vpack.c.bf16 %v1242_v61, %v1241_v60 }
 0x129   : > { %v1567_v9 = vmul.f32 -1.442695, %v792_v8 }
 0x12b   : > { %1940 = vpow2.f32 %v1567_v9 }
 0x12c   : > { %1942 = vpow2.f32 %v1568_v11 }
 0x135   : > { %v1941_v12 = vpop.eup %1940 }
 0x136   : > { %v806_v13 = vadd.f32 1.0, %v1941_v12  ;;  %v1943_v15 = vpop.eup %1942 }
 0x137   : > { %v807_v17 = vadd.f32 1.0, %v1943_v15 }
 0x138   : > { %1944 = vrcp.f32 %v806_v13 }
 0x142   : > { %v1945_v20 = vpop.eup %1944 }
 0x1a0   : > { %v900_v14 = vpop.f32.mrb[2].mxu0 }
 0x1a1   : > { %v902_v16 = vpop.f32.mrb[3].mxu0 }
 0x1a2   : > { %1946 = vrcp.f32 %v902_v16 }
 0x1a4   : > { %v974_v18 = vpop.f32.mrb[0].mxu1 }
 0x1a5   : > { %v976_v19 = vpop.f32.mrb[1].mxu1 }
 0x1a6   : > { %1948 = vrcp.f32 %v976_v19 }
 0x1a7   : > { %1950 = vrcp.f32 %v807_v17 }
 0x1ac   : > { %v1947_v22 = vpop.eup %1946 }
 0x1ad   : > { %v980_v23 = vmul.f32 %v1947_v22, %v900_v14 }
 0x1af   : > { %v983_v24 = vmul.f32 %v1945_v20, %v980_v23 }
 0x1b0   : > { %v1949_v25 = vpop.eup %1948 }
 0x1b1   : > { %1726 = vmatprep.mubr.f32.mxu1 %v983_v24  ;;  %v982_v26 = vmul.f32 %v1949_v25, %v974_v18  ;;  %v1951_v27 = vpop.eup %1950 }
 0x1b3   : > { %v984_v28 = vmul.f32 %v1951_v27, %v982_v26 }
 0x1b5   : > { %1727 = vmatmul.mubr.f32.vlgmr.msra.gmra.mrb[2].mxu1 %v984_v28 }
 0x1b6   : > { %1898 = vmatpush3.bf16.msra.mxu1 %v1895_v57 }
 0x1b7   : > { %1900 = vmatprep.subr.bf16.mxu1 %v1899_v59 }
 0x1ba   : > { %1902 = vmatpush3.bf16.msra.mxu1 %v1899_v59 }
 0x1bb   : > { %1904 = vmatprep.subr.bf16.mxu1 %v1903_v62 }
 0x1be   : > { %1906 = vmatpush3.bf16.msra.mxu1 %v1903_v62 }
 0x1bf   : > { %1908 = vmatprep.subr.bf16.mxu1 %v1907_v40 }
 0x1c2   : > { %1910 = vmatpush3.bf16.msra.mxu1 %v1907_v40 }
 0x1c3   : > { %1912 = vmatprep.subr.bf16.mxu1 %v1911_v43 }
 0x1c6   : > { %1914 = vmatpush3.bf16.msra.mxu1 %v1911_v43 }
 0x1c7   : > { %1916 = vmatprep.subr.bf16.mxu1 %v1915_v46 }
 0x1ca   : > { %1918 = vmatpush3.bf16.msra.mxu1 %v1915_v46 }
 0x1cb   : > { %1920 = vmatprep.subr.bf16.mxu1 %v1919_v49 }
 0x1ce   : > { %1922 = vmatpush3.bf16.msra.mxu1 %v1919_v49 }
 0x1cf   : > { %1924 = vmatprep.subr.bf16.mxu1 %v1923_v52 }
 0x1d2   : > { %1926 = vmatpush3.bf16.msra.mxu1 %v1923_v52 }
 0x288   : > { %v1728_v0 = vpop.f32.mrb[2].mxu1 }
 0x289   : > { %v1080_v1 = vadd.f32 %v1728_v0, %v1571_v63  ;;  %v1074_v2 = vpop.f32.mrb[3].mxu1 }
 0x28a   : > { %v1075_v3 = vadd.f32 %v1571_v63, %v1074_v2 }
 0x28b   : > { %v1086_v4 = vadd.f32 %v1080_v1, %v2163_v35 }
 0x28c   : > { %v1085_v5 = vadd.f32 %v1075_v3, %v2151_v21 }
 0x28d   : > { %v1088_v6 = vmul.f32 %v1086_v4, %v1086_v4 }
 0x28e   : > { %v1087_v7 = vmul.f32 %v1085_v5, %v1085_v5  ;;  %v1089_v8 = vadd.f32 %v1086_v4, %v1085_v5 }
 0x290   : > { %v1090_v9 = vrot.slane %v1089_v8, 4  ;;  %v1096_v10 = vadd.f32 %v1088_v6, %v1087_v7 }
 0x292   : > { %v1091_v11 = vadd.f32 %v1090_v9, %v1089_v8  ;;  %v1097_v12 = vrot.slane %v1096_v10, 4 }
 0x294   : > { %v1092_v13 = vrot.slane %v1091_v11, 2  ;;  %v1098_v14 = vadd.f32 %v1097_v12, %v1096_v10 }
 0x296   : > { %v1093_v15 = vadd.f32 %v1092_v13, %v1091_v11  ;;  %v1099_v16 = vrot.slane %v1098_v14, 2 }
 0x298   : > { %v1094_v17 = vrot.slane %v1093_v15, 1  ;;  %v1100_v18 = vadd.f32 %v1099_v16, %v1098_v14 }
 0x29a   : > { %v1095_v19 = vadd.f32 %v1094_v17, %v1093_v15  ;;  %v1101_v20 = vrot.slane %v1100_v18, 1 }
 0x29c   : > { %v1102_v35 = vadd.f32 %v1101_v20, %v1100_v18  ;;  %v1103_v22 = vmul.f32 0.0625, %v1095_v19 }
 0x29e   : > { %v1104_v21 = vmul.f32 0.0625, %v1102_v35  ;;  %v1105_v23 = vmul.f32 %v1103_v22, %v1103_v22  ;;  %v1107_v24 = vsub.f32 %v1085_v5, %v1103_v22  ;;  %v1108_v25 = vsub.f32 %v1086_v4, %v1103_v22  ;;  %v1575_v4 = vld [vmem:[%s2314_s29] ss:$0 sm:$0xff] }
 0x2a0   : > { %v1106_v26 = vsub.f32 %v1104_v21, %v1105_v23 }
 0x2a2   : > { %v1109_v27 = vadd.f32 1e-05, %v1106_v26 }
 0x2a4   : > { %1952 = vrsqrt.f32 %v1109_v27 }
 0x2ae   : > { %v1953_v28 = vpop.eup %1952 }
 0x2af   : > { %v1111_v30 = vmul.f32 %v1953_v28, %v1107_v24  ;;  %v1112_v31 = vmul.f32 %v1953_v28, %v1108_v25 }
 0x2b1   : > { %v1119_v33 = vmul.f32 %v1572_v29, %v1111_v30  ;;  %v1120_v34 = vmul.f32 %v1572_v29, %v1112_v31 }
 0x2b3   : > { %v1127_v36 = vadd.f32 %v1573_v32, %v1119_v33  ;;  %v1128_v37 = vadd.f32 %v1573_v32, %v1120_v34  ;;  %v1576_v34 = vld [vmem:[%s688_s16] ss:$0 sm:$0xff] }
 0x2b5   : > { %1761 = vmatprep.mubr.f32.mxu0 %v1127_v36 }
 0x2b6   : > { %1762 = vmatmul.mubr.f32.vlgmr.msra.gmra.mrb[4].mxu0 %v1128_v37 }
 0x389   : > { %v1763_v54 = vpop.f32.mrb[4].mxu0 }
 0x38a   : > { %v1224_v55 = vadd.f32 %v1763_v54, %v1574_v53  ;;  %v1218_v56 = vpop.f32.mrb[5].mxu0 }
 0x38b   : > { %v1219_v57 = vadd.f32 %v1574_v53, %v1218_v56 }
 0x38c   : > { %v1230_v58 = vmul.f32 0.70710677, %v1224_v55  ;;  %v1228_v1 = vmul.f32 0.5, %v1224_v55 }
 0x38d   : > { %v1229_v59 = vmul.f32 0.70710677, %v1219_v57  ;;  %v1227_v63 = vmul.f32 0.5, %v1219_v57 }
 0x38e   : > { %1954 = verf.f32 %v1230_v58 }
 0x38f   : > { %1956 = verf.f32 %v1229_v59 }
 0x398   : > { %v1955_v60 = vpop.eup %1954 }
 0x399   : > { %v1957_v61 = vpop.eup %1956  ;;  %v1234_v62 = vadd.f32 1.0, %v1955_v60 }
 0x39a   : > { %v1233_v0 = vadd.f32 1.0, %v1957_v61 }
 0x39b   : > { %v1236_v3 = vmul.f32 %v1234_v62, %v1228_v1 }
 0x39c   : > { %v1235_v2 = vmul.f32 %v1233_v0, %v1227_v63 }
 0x39e   : > { %1796 = vmatprep.mubr.f32.mxu1 %v1235_v2 }
 0x39f   : > { %1797 = vmatmul.mubr.f32.vlgmr.msra.gmra.mrb[4].mxu1 %v1236_v3 }
 0x472   : > { %v1798_v5 = vpop.f32.mrb[4].mxu1 }
 0x473   : > { %v1332_v6 = vadd.f32 %v1798_v5, %v1575_v4  ;;  %v1326_v7 = vpop.f32.mrb[5].mxu1 }
 0x474   : > { %v1327_v8 = vadd.f32 %v1575_v4, %v1326_v7 }
 0x475   : > { %v1338_v9 = vadd.f32 %v1332_v6, %v1128_v37 }
 0x476   : > { %v1337_v10 = vadd.f32 %v1327_v8, %v1127_v36 }
 0x477   : > { %v1340_v11 = vmul.f32 %v1338_v9, %v1338_v9 }
 0x478   : > { %v1339_v12 = vmul.f32 %v1337_v10, %v1337_v10  ;;  %v1341_v13 = vadd.f32 %v1338_v9, %v1337_v10 }
 0x47a   : > { %v1342_v14 = vrot.slane %v1341_v13, 4  ;;  %v1348_v15 = vadd.f32 %v1340_v11, %v1339_v12 }
 0x47c   : > { %v1343_v16 = vadd.f32 %v1342_v14, %v1341_v13  ;;  %v1349_v17 = vrot.slane %v1348_v15, 4 }
 0x47e   : > { %v1344_v18 = vrot.slane %v1343_v16, 2  ;;  %v1350_v19 = vadd.f32 %v1349_v17, %v1348_v15 }
 0x480   : > { %v1345_v20 = vadd.f32 %v1344_v18, %v1343_v16  ;;  %v1351_v35 = vrot.slane %v1350_v19, 2 }
 0x482   : > { %v1346_v22 = vrot.slane %v1345_v20, 1  ;;  %v1352_v21 = vadd.f32 %v1351_v35, %v1350_v19 }
 0x484   : > { %v1347_v23 = vadd.f32 %v1346_v22, %v1345_v20  ;;  %v1353_v24 = vrot.slane %v1352_v21, 1 }
 0x486   : > { %v1354_v25 = vadd.f32 %v1353_v24, %v1352_v21  ;;  %v1355_v26 = vmul.f32 0.0625, %v1347_v23 }
 0x488   : > { %v1356_v27 = vmul.f32 0.0625, %v1354_v25  ;;  %v1357_v28 = vmul.f32 %v1355_v26, %v1355_v26  ;;  %v1359_v29 = vsub.f32 %v1337_v10, %v1355_v26  ;;  %v1360_v30 = vsub.f32 %v1338_v9, %v1355_v26 }
 0x48a   : > { %v1358_v31 = vsub.f32 %v1356_v27, %v1357_v28 }
 0x48c   : > { %v1361_v32 = vadd.f32 1e-05, %v1358_v31 }
 0x48e   : > { %1958 = vrsqrt.f32 %v1361_v32 }
 0x498   : > { %v1959_v33 = vpop.eup %1958 }
 0x499   : > { %v1363_v36 = vmul.f32 %v1959_v33, %v1359_v29  ;;  %v1364_v37 = vmul.f32 %v1959_v33, %v1360_v30  ;;  %1386 = sbr.rel (%p1578_p5) target bundleno = 1185 (0x4a1), region = 88 }
 0x49b   : > { %v1371_v39 = vmul.f32 %v1576_v34, %v1363_v36  ;;  %v1372_v40 = vmul.f32 %v1576_v34, %v1364_v37 }
 0x49d   : > { %v1379_v41 = vadd.f32 %v1577_v38, %v1371_v39  ;;  %v1380_v42 = vadd.f32 %v1577_v38, %v1372_v40 }
 0x49f   : > { %1381 = vst [vmem:[#allocation2] sm:$0xff] %v1379_v41  ;;  %1382 = vst [vmem:[#allocation2 + $0x8] sm:$0xff] %v1380_v42 }
 0x4a0   : > { %1387 = vst [vmem:[%s2317_s25] sm:$0xff] %v1379_v41  ;;  %1388 = vst [vmem:[%s2317_s25 + $0x8] sm:$0xff] %v1380_v42 }
 0x4a1 PF: > { %s2318_s20 = sld [smem:[#allocation3_spill]] }
 0x4a7   : > { %s25_s18 = sadd.s32 1, %s2318_s20  }
 0x4a8   : > { %p22_p6 = scmp.ge.s32.totalorder %s25_s18, 4  }
 0x4aa   :  { %24 = sbr.rel (!%p22_p6) target bundleno = 10 (0xa), region = 153 }

</bundles_post_ra>
